<compile_context>
chip_gen: v6e
topology: v6e:2x2x1
jax: 0.10.0
libtpu: 0.0.40
codegen_flags: <defaults>
</compile_context>

<pallas_src>
import functools

import jax
import jax.numpy as jnp
from jax.experimental import pallas as pl
from jax.experimental.pallas import tpu as pltpu

# ----------------------------- fixed geometry ------------------------------ #
H0, W0, C0 = 32, 32, 3          # input image (NCHW in the API, NHWC inside)
K = 5                           # conv kernel size
C1, C2 = 6, 16                  # conv1 / conv2 output channels
OH1, OW1 = H0 - K + 1, W0 - K + 1          # 28, 28
PH1, PW1 = OH1 // 2, OW1 // 2              # 14, 14
OH2, OW2 = PH1 - K + 1, PW1 - K + 1        # 10, 10
PH2, PW2 = OH2 // 2, OW2 // 2              # 5, 5
F1, F2, F3 = 120, 84, 10
FPAD = 128                                  # lane-padded fc width

XW = W0 * C0                    # 96  : conv1 input slab width  (w*3  + c)
Y1W = OW1 * C1                  # 168 : conv1 output slab width (w*6  + o)
P1W = PW1 * C1                  # 84  : compact pool1 slab width (wp*6 + c)
Y2W = OW2 * C2                  # 160 : conv2 output slab width (w*16 + o)
P2W = PW2 * C2                  # 80  : compact pool2 slab width (wp*16 + c)


# ------------------------------ fused kernel ------------------------------- #

def _lenet_fused_kernel(x_ref, c1w_ref, c1b_ref,
                        p1re_ref, p1ro_ref, p1ce_ref, p1co_ref,
                        c2w_ref, c2b_ref,
                        p2re_ref, p2ro_ref, p2ce_ref, p2co_ref,
                        f1w_ref, f1b_ref, f2w_ref, f2b_ref, f3w_ref, f3b_ref,
                        out_ref, p1c_ref, p2c_ref):
    """Whole LeNet forward for one image; everything stays in VMEM/vregs."""
    f32 = jnp.float32
    dot = functools.partial(jnp.dot, preferred_element_type=f32)

    # ---- conv1 + ReLU: (28, 168) slab, layout (h, C1*w + o). ----------------
    # 5 shifted matmuls against banded weights == im2col fully inside the kernel.
    acc = jnp.zeros((OH1, Y1W), f32)
    for i in range(K):
        acc = acc + dot(x_ref[i:i + OH1, :], c1w_ref[i])
    y1 = jnp.maximum(acc + c1b_ref[...], 0.0)

    # ---- maxpool1 2x2 (compacting): row gather-max, then column gather-max.
    # Gather matrices are 0/1 selection matrices built once at init; result is
    # a dense (14, 84) slab with layout (hp, C1*wp + c) -- no stale lanes.
    t1 = jnp.maximum(dot(p1re_ref[...], y1), dot(p1ro_ref[...], y1))        # (14, 168)
    p1c_ref[...] = jnp.maximum(dot(t1, p1ce_ref[...]), dot(t1, p1co_ref[...]))  # (14, 84)

    # ---- conv2 + ReLU on the compact pooled slab: (10, 160), (h2, C2*w2 + o).
    acc = jnp.zeros((OH2, Y2W), f32)
    for i in range(K):
        acc = acc + dot(p1c_ref[i:i + OH2, :], c2w_ref[i])
    y2 = jnp.maximum(acc + c2b_ref[...], 0.0)

    # ---- maxpool2 2x2 (compacting): (5, 80) slab, layout (hp, C2*wp + c). ---
    t2 = jnp.maximum(dot(p2re_ref[...], y2), dot(p2ro_ref[...], y2))        # (5, 160)
    p2c_ref[...] = jnp.maximum(dot(t2, p2ce_ref[...]), dot(t2, p2co_ref[...]))  # (5, 80)

    # ---- fc1 + ReLU: torch (c,h,w) flatten order baked into the packed
    # (5, 80, 128) weight; 5 row-vector matmuls, one per pooled row hp.
    acc = jnp.zeros((1, FPAD), f32)
    for hp in range(PH2):
        acc = acc + dot(p2c_ref[hp:hp + 1, :], f1w_ref[hp])
    h = jnp.maximum(acc + f1b_ref[...], 0.0)

    # ---- fc2 + ReLU, fc3 (operands pre-padded to 128 lanes) -----------------
    h = jnp.maximum(dot(h, f2w_ref[...]) + f2b_ref[...], 0.0)
    logits = dot(h, f3w_ref[...]) + f3b_ref[...]

    # (8, 128) sublane/lane-dense store; the wrapper picks row 0, cols [:10].
    out_ref[...] = jnp.broadcast_to(logits, (8, FPAD))


# --------------------------- parameter packing ----------------------------- #

def _banded_conv_weight(w_oihw, w_in, in_stride, out_stride):
    """Pack a KxK conv weight into per-tap banded matmul matrices.

    Returns B with shape (kh, w_in*in_stride, (w_in-kw+1)*out_stride) where
      B[i, in_stride*(w+j) + c, out_stride*w + o] = w_oihw[o, c, i, j]
    and every other entry is zero.
    """
    cout, cin, kh, kw = w_oihw.shape
    ow = w_in - kw + 1
    wt = jnp.transpose(w_oihw, (2, 3, 1, 0)).astype(jnp.float32)  # (kh,kw,cin,cout)
    eye = jnp.eye(ow, dtype=jnp.float32)
    taps = []
    for i in range(kh):
        acc = jnp.zeros((w_in * in_stride, ow * out_stride), jnp.float32)
        for j in range(kw):
            blk = jnp.pad(wt[i, j], ((0, in_stride - cin), (0, out_stride - cout)))
            band = jnp.kron(eye, blk)                       # block-diagonal over w
            acc = acc + jnp.pad(band, ((in_stride * j,
                                        in_stride * (kw - 1 - j)), (0, 0)))
        taps.append(acc)
    return jnp.stack(taps)                                  # (kh, rows, cols)


def _gather_rows(idx, n_in):
    """(len(idx), n_in) 0/1 matrix G with G[j, idx[j]] = 1  (G @ X gathers rows)."""
    idx = jnp.asarray(idx, jnp.int32)
    return (idx[:, None] == jnp.arange(n_in)[None, :]).astype(jnp.float32)


def _gather_cols(idx, n_in):
    """(n_in, len(idx)) 0/1 matrix G with G[idx[j], j] = 1  (X @ G gathers cols)."""
    idx = jnp.asarray(idx, jnp.int32)
    return (jnp.arange(n_in)[:, None] == idx[None, :]).astype(jnp.float32)


def pack_params(p):
    """One-time repack of PyTorch-layout params into kernel-ready operands."""
    f32 = jnp.float32

    # conv1: input slab (32, 96) -> output slab (28, 168)
    c1w = _banded_conv_weight(p["conv1_w"], W0, C0, C1)             # (5, 96, 168)
    c1b = jnp.tile(p["conv1_b"].astype(f32), OW1)[None, :]          # (1, 168)

    # pool1 gather matrices: rows 2hp / 2hp+1; cols 6*(2wp)+o / 6*(2wp+1)+o.
    hp1 = jnp.arange(PH1)
    p1re = _gather_rows(2 * hp1, OH1)                               # (14, 28)
    p1ro = _gather_rows(2 * hp1 + 1, OH1)                           # (14, 28)
    wc1 = (2 * C1 * jnp.arange(PW1))[:, None] + jnp.arange(C1)[None, :]
    p1ce = _gather_cols(wc1.reshape(-1), Y1W)                       # (168, 84)
    p1co = _gather_cols((wc1 + C1).reshape(-1), Y1W)                # (168, 84)

    # conv2: compact pool1 slab (14, 84) -> output slab (10, 160)
    c2w = _banded_conv_weight(p["conv2_w"], PW1, C1, C2)            # (5, 84, 160)
    c2b = jnp.tile(p["conv2_b"].astype(f32), OW2)[None, :]          # (1, 160)

    # pool2 gather matrices: rows 2hp / 2hp+1; cols 16*(2wp)+o / 16*(2wp+1)+o.
    hp2 = jnp.arange(PH2)
    p2re = _gather_rows(2 * hp2, OH2)                               # (5, 10)
    p2ro = _gather_rows(2 * hp2 + 1, OH2)                           # (5, 10)
    wc2 = (2 * C2 * jnp.arange(PW2))[:, None] + jnp.arange(C2)[None, :]
    p2ce = _gather_cols(wc2.reshape(-1), Y2W)                       # (160, 80)
    p2co = _gather_cols((wc2 + C2).reshape(-1), Y2W)                # (160, 80)

    # fc1: permute rows from torch (c,hp,wp) flatten order to the kernel's
    # compact (hp, 16*wp + c) slab order, pad 120 -> 128 output lanes.
    t = jnp.transpose(p["fc1_w"].reshape(F1, C2, PH2, PW2), (2, 3, 1, 0))
    t = jnp.pad(t, ((0, 0), (0, 0), (0, 0), (0, FPAD - F1))).astype(f32)
    f1w = t.reshape(PH2, PW2 * C2, FPAD)                            # (5, 80, 128)
    f1b = jnp.pad(p["fc1_b"].astype(f32), (0, FPAD - F1))[None, :]
    f2w = jnp.pad(p["fc2_w"].T.astype(f32), ((0, FPAD - F1), (0, FPAD - F2)))
    f2b = jnp.pad(p["fc2_b"].astype(f32), (0, FPAD - F2))[None, :]
    f3w = jnp.pad(p["fc3_w"].T.astype(f32), ((0, FPAD - F2), (0, FPAD - F3)))
    f3b = jnp.pad(p["fc3_b"].astype(f32), (0, FPAD - F3))[None, :]

    return dict(c1w=c1w, c1b=c1b, p1re=p1re, p1ro=p1ro, p1ce=p1ce, p1co=p1co,
                c2w=c2w, c2b=c2b, p2re=p2re, p2ro=p2ro, p2ce=p2ce, p2co=p2co,
                f1w=f1w, f1b=f1b, f2w=f2w, f2b=f2b, f3w=f3w, f3b=f3b)


# -------------------------------- forward ---------------------------------- #

_WEIGHT_ORDER = ("c1w", "c1b", "p1re", "p1ro", "p1ce", "p1co",
                 "c2w", "c2b", "p2re", "p2ro", "p2ce", "p2co",
                 "f1w", "f1b", "f2w", "f2b", "f3w", "f3b")


def net_forward(x_nchw, q):
    n = x_nchw.shape[0]
    # NCHW -> NHWC -> per-image 2-D slab (rows = n*H, lanes = W*C); free reshape.
    x2d = jnp.transpose(x_nchw, (0, 2, 3, 1)).astype(jnp.float32)
    x2d = x2d.reshape(n * H0, XW)

    def const_spec(arr):
        nd = arr.ndim
        return pl.BlockSpec(arr.shape, lambda b, _nd=nd: (0,) * _nd)

    out = pl.pallas_call(
        _lenet_fused_kernel,
        out_shape=jax.ShapeDtypeStruct((n * 8, FPAD), jnp.float32),
        grid=(n,),
        in_specs=[pl.BlockSpec((H0, XW), lambda b: (b, 0))]
                 + [const_spec(q[name]) for name in _WEIGHT_ORDER],
        out_specs=pl.BlockSpec((8, FPAD), lambda b: (b, 0)),
        scratch_shapes=[pltpu.VMEM((PH1, P1W), jnp.float32),      # compact pool1
                        pltpu.VMEM((PH2, P2W), jnp.float32)],     # compact pool2
        compiler_params=pltpu.CompilerParams(
            dimension_semantics=("parallel",)),                    # v7x: 2 TCs
    )(x2d, *[q[name] for name in _WEIGHT_ORDER])
    return out.reshape(n, 8, FPAD)[:, 0, :F3]


# ------------------------------- parameters -------------------------------- #

def _uniform(key, shape, fan_in):
    bound = 1.0 / (fan_in ** 0.5)
    return jax.random.uniform(key, shape, jnp.float32, -bound, bound)


def init_params(key):
    ks = jax.random.split(key, 10)
    return {
        "conv1_w": _uniform(ks[0], (6, 3, 5, 5), 3 * 25),
        "conv1_b": _uniform(ks[1], (6,), 3 * 25),
        "conv2_w": _uniform(ks[2], (16, 6, 5, 5), 6 * 25),
        "conv2_b": _uniform(ks[3], (16,), 6 * 25),
        "fc1_w": _uniform(ks[4], (120, 16 * 5 * 5), 16 * 5 * 5),
        "fc1_b": _uniform(ks[5], (120,), 16 * 5 * 5),
        "fc2_w": _uniform(ks[6], (84, 120), 120),
        "fc2_b": _uniform(ks[7], (84,), 120),
        "fc3_w": _uniform(ks[8], (10, 84), 84),
        "fc3_b": _uniform(ks[9], (10,), 84),
    }


# ------------------------- pure-JAX reference check ------------------------ #

def net_forward_reference(x_nchw, p):
    """Pure-JAX mirror of the PyTorch module, for in-script validation."""
    x = x_nchw.astype(jnp.float32)

    def conv_relu(x, w, b):
        y = jax.lax.conv_general_dilated(
            x, w.astype(jnp.float32), (1, 1), "VALID",
            dimension_numbers=("NCHW", "OIHW", "NCHW"),
            precision=jax.lax.Precision.HIGHEST)
        return jax.nn.relu(y + b[None, :, None, None])

    def pool(x):
        return jax.lax.reduce_window(x, -jnp.inf, jax.lax.max,
                                     (1, 1, 2, 2), (1, 1, 2, 2), "VALID")

    x = pool(conv_relu(x, p["conv1_w"], p["conv1_b"]))
    x = pool(conv_relu(x, p["conv2_w"], p["conv2_b"]))
    x = x.reshape(x.shape[0], -1)                       # torch.flatten(x, 1)
    hi = jax.lax.Precision.HIGHEST
    x = jax.nn.relu(jnp.dot(x, p["fc1_w"].T, precision=hi) + p["fc1_b"])
    x = jax.nn.relu(jnp.dot(x, p["fc2_w"].T, precision=hi) + p["fc2_b"])
    return jnp.dot(x, p["fc3_w"].T, precision=hi) + p["fc3_b"]


if __name__ == "__main__":
    key = jax.random.PRNGKey(0)
    k_x, k_p = jax.random.split(key)
    x = jax.random.normal(k_x, (2, 3, 32, 32), dtype=jnp.float32)   # NCHW input
    params = init_params(k_p)
    packed = pack_params(params)     # one-time weight repack (off the fwd path)

    out = jax.jit(net_forward)(x, packed)
    out = jax.block_until_ready(out)
    assert out.shape == (2, 10) and out.dtype == jnp.float32

    ref = net_forward_reference(x, params)
    assert jnp.allclose(out, ref, atol=5e-3, rtol=1e-3), (
        f"max abs err {jnp.max(jnp.abs(out - ref))}")
    print("KERNEL_OK")
</pallas_src>

<mosaic_0001>
module attributes {stable_mosaic.version = 11 : i64} {
  func.func @_lenet_fused_kernel(%arg0: i32, %arg1: memref<32x96xf32, #tpu.memory_space<vmem>>, %arg2: memref<5x96x168xf32, #tpu.memory_space<vmem>>, %arg3: memref<1x168xf32, #tpu.memory_space<vmem>>, %arg4: memref<14x28xf32, #tpu.memory_space<vmem>>, %arg5: memref<14x28xf32, #tpu.memory_space<vmem>>, %arg6: memref<168x84xf32, #tpu.memory_space<vmem>>, %arg7: memref<168x84xf32, #tpu.memory_space<vmem>>, %arg8: memref<5x84x160xf32, #tpu.memory_space<vmem>>, %arg9: memref<1x160xf32, #tpu.memory_space<vmem>>, %arg10: memref<5x10xf32, #tpu.memory_space<vmem>>, %arg11: memref<5x10xf32, #tpu.memory_space<vmem>>, %arg12: memref<160x80xf32, #tpu.memory_space<vmem>>, %arg13: memref<160x80xf32, #tpu.memory_space<vmem>>, %arg14: memref<5x80x128xf32, #tpu.memory_space<vmem>>, %arg15: memref<1x128xf32, #tpu.memory_space<vmem>>, %arg16: memref<128x128xf32, #tpu.memory_space<vmem>>, %arg17: memref<1x128xf32, #tpu.memory_space<vmem>>, %arg18: memref<128x128xf32, #tpu.memory_space<vmem>>, %arg19: memref<1x128xf32, #tpu.memory_space<vmem>>, %arg20: memref<8x128xf32, #tpu.memory_space<vmem>>, %arg21: memref<14x84xf32, #tpu.memory_space<vmem>>, %arg22: memref<5x80xf32, #tpu.memory_space<vmem>>) attributes {dimension_semantics = [#tpu.dimension_semantics<parallel>], iteration_bounds = array<i64: 2>, scalar_prefetch = 0 : i64, scratch_operands = 2 : i64, tpu.core_type = #tpu.core_type<tc>, window_params = [{transform_indices = @transform_0, window_bounds = array<i64: 32, 96>}, {pipeline_mode = #tpu.pipeline_mode<synchronous>, transform_indices = @transform_1, window_bounds = array<i64: 5, 96, 168>}, {pipeline_mode = #tpu.pipeline_mode<synchronous>, transform_indices = @transform_2, window_bounds = array<i64: 1, 168>}, {pipeline_mode = #tpu.pipeline_mode<synchronous>, transform_indices = @transform_3, window_bounds = array<i64: 14, 28>}, {pipeline_mode = #tpu.pipeline_mode<synchronous>, transform_indices = @transform_4, window_bounds = array<i64: 14, 28>}, {pipeline_mode = #tpu.pipeline_mode<synchronous>, transform_indices = @transform_5, window_bounds = array<i64: 168, 84>}, {pipeline_mode = #tpu.pipeline_mode<synchronous>, transform_indices = @transform_6, window_bounds = array<i64: 168, 84>}, {pipeline_mode = #tpu.pipeline_mode<synchronous>, transform_indices = @transform_7, window_bounds = array<i64: 5, 84, 160>}, {pipeline_mode = #tpu.pipeline_mode<synchronous>, transform_indices = @transform_8, window_bounds = array<i64: 1, 160>}, {pipeline_mode = #tpu.pipeline_mode<synchronous>, transform_indices = @transform_9, window_bounds = array<i64: 5, 10>}, {pipeline_mode = #tpu.pipeline_mode<synchronous>, transform_indices = @transform_10, window_bounds = array<i64: 5, 10>}, {pipeline_mode = #tpu.pipeline_mode<synchronous>, transform_indices = @transform_11, window_bounds = array<i64: 160, 80>}, {pipeline_mode = #tpu.pipeline_mode<synchronous>, transform_indices = @transform_12, window_bounds = array<i64: 160, 80>}, {pipeline_mode = #tpu.pipeline_mode<synchronous>, transform_indices = @transform_13, window_bounds = array<i64: 5, 80, 128>}, {pipeline_mode = #tpu.pipeline_mode<synchronous>, transform_indices = @transform_14, window_bounds = array<i64: 1, 128>}, {pipeline_mode = #tpu.pipeline_mode<synchronous>, transform_indices = @transform_15, window_bounds = array<i64: 128, 128>}, {pipeline_mode = #tpu.pipeline_mode<synchronous>, transform_indices = @transform_16, window_bounds = array<i64: 1, 128>}, {pipeline_mode = #tpu.pipeline_mode<synchronous>, transform_indices = @transform_17, window_bounds = array<i64: 128, 128>}, {pipeline_mode = #tpu.pipeline_mode<synchronous>, transform_indices = @transform_18, window_bounds = array<i64: 1, 128>}, {transform_indices = @transform_19, window_bounds = array<i64: 8, 128>}]} {
    %cst = arith.constant 0.000000e+00 : f32
    %0 = vector.broadcast %cst : f32 to vector<28x168xf32>
    %c0 = arith.constant 0 : index
    %c0_0 = arith.constant 0 : index
    %1 = vector.load %arg1[%c0, %c0_0] : memref<32x96xf32, #tpu.memory_space<vmem>>, vector<28x96xf32>
    %c0_1 = arith.constant 0 : index
    %c0_2 = arith.constant 0 : index
    %c0_3 = arith.constant 0 : index
    %2 = vector.load %arg2[%c0_1, %c0_2, %c0_3] : memref<5x96x168xf32, #tpu.memory_space<vmem>>, vector<1x96x168xf32>
    %3 = vector.shape_cast %2 : vector<1x96x168xf32> to vector<96x168xf32>
    %cst_4 = arith.constant dense<0.000000e+00> : vector<28x168xf32>
    %4 = tpu.matmul %1, %3, %cst_4 {dimension_numbers = #tpu.dot_dimension_numbers<[1], [0], [0], [1], [0, 0, 1, 1], [], []>} : vector<28x96xf32>, vector<96x168xf32>, vector<28x168xf32> -> vector<28x168xf32>
    %5 = arith.addf %0, %4 : vector<28x168xf32>
    %c1 = arith.constant 1 : index
    %c0_5 = arith.constant 0 : index
    %6 = vector.load %arg1[%c1, %c0_5] : memref<32x96xf32, #tpu.memory_space<vmem>>, vector<28x96xf32>
    %c1_6 = arith.constant 1 : index
    %c0_7 = arith.constant 0 : index
    %c0_8 = arith.constant 0 : index
    %7 = vector.load %arg2[%c1_6, %c0_7, %c0_8] : memref<5x96x168xf32, #tpu.memory_space<vmem>>, vector<1x96x168xf32>
    %8 = vector.shape_cast %7 : vector<1x96x168xf32> to vector<96x168xf32>
    %cst_9 = arith.constant dense<0.000000e+00> : vector<28x168xf32>
    %9 = tpu.matmul %6, %8, %cst_9 {dimension_numbers = #tpu.dot_dimension_numbers<[1], [0], [0], [1], [0, 0, 1, 1], [], []>} : vector<28x96xf32>, vector<96x168xf32>, vector<28x168xf32> -> vector<28x168xf32>
    %10 = arith.addf %5, %9 : vector<28x168xf32>
    %c2 = arith.constant 2 : index
    %c0_10 = arith.constant 0 : index
    %11 = vector.load %arg1[%c2, %c0_10] : memref<32x96xf32, #tpu.memory_space<vmem>>, vector<28x96xf32>
    %c2_11 = arith.constant 2 : index
    %c0_12 = arith.constant 0 : index
    %c0_13 = arith.constant 0 : index
    %12 = vector.load %arg2[%c2_11, %c0_12, %c0_13] : memref<5x96x168xf32, #tpu.memory_space<vmem>>, vector<1x96x168xf32>
    %13 = vector.shape_cast %12 : vector<1x96x168xf32> to vector<96x168xf32>
    %cst_14 = arith.constant dense<0.000000e+00> : vector<28x168xf32>
    %14 = tpu.matmul %11, %13, %cst_14 {dimension_numbers = #tpu.dot_dimension_numbers<[1], [0], [0], [1], [0, 0, 1, 1], [], []>} : vector<28x96xf32>, vector<96x168xf32>, vector<28x168xf32> -> vector<28x168xf32>
    %15 = arith.addf %10, %14 : vector<28x168xf32>
    %c3 = arith.constant 3 : index
    %c0_15 = arith.constant 0 : index
    %16 = vector.load %arg1[%c3, %c0_15] : memref<32x96xf32, #tpu.memory_space<vmem>>, vector<28x96xf32>
    %c3_16 = arith.constant 3 : index
    %c0_17 = arith.constant 0 : index
    %c0_18 = arith.constant 0 : index
    %17 = vector.load %arg2[%c3_16, %c0_17, %c0_18] : memref<5x96x168xf32, #tpu.memory_space<vmem>>, vector<1x96x168xf32>
    %18 = vector.shape_cast %17 : vector<1x96x168xf32> to vector<96x168xf32>
    %cst_19 = arith.constant dense<0.000000e+00> : vector<28x168xf32>
    %19 = tpu.matmul %16, %18, %cst_19 {dimension_numbers = #tpu.dot_dimension_numbers<[1], [0], [0], [1], [0, 0, 1, 1], [], []>} : vector<28x96xf32>, vector<96x168xf32>, vector<28x168xf32> -> vector<28x168xf32>
    %20 = arith.addf %15, %19 : vector<28x168xf32>
    %c4 = arith.constant 4 : index
    %c0_20 = arith.constant 0 : index
    %21 = vector.load %arg1[%c4, %c0_20] : memref<32x96xf32, #tpu.memory_space<vmem>>, vector<28x96xf32>
    %c4_21 = arith.constant 4 : index
    %c0_22 = arith.constant 0 : index
    %c0_23 = arith.constant 0 : index
    %22 = vector.load %arg2[%c4_21, %c0_22, %c0_23] : memref<5x96x168xf32, #tpu.memory_space<vmem>>, vector<1x96x168xf32>
    %23 = vector.shape_cast %22 : vector<1x96x168xf32> to vector<96x168xf32>
    %cst_24 = arith.constant dense<0.000000e+00> : vector<28x168xf32>
    %24 = tpu.matmul %21, %23, %cst_24 {dimension_numbers = #tpu.dot_dimension_numbers<[1], [0], [0], [1], [0, 0, 1, 1], [], []>} : vector<28x96xf32>, vector<96x168xf32>, vector<28x168xf32> -> vector<28x168xf32>
    %25 = arith.addf %20, %24 : vector<28x168xf32>
    %c0_25 = arith.constant 0 : index
    %c0_26 = arith.constant 0 : index
    %26 = vector.load %arg3[%c0_25, %c0_26] : memref<1x168xf32, #tpu.memory_space<vmem>>, vector<1x168xf32>
    %27 = vector.broadcast %26 : vector<1x168xf32> to vector<28x168xf32>
    %28 = arith.addf %25, %27 : vector<28x168xf32>
    %cst_27 = arith.constant 0.000000e+00 : f32
    %29 = vector.broadcast %cst_27 : f32 to vector<28x168xf32>
    %30 = arith.maximumf %28, %29 : vector<28x168xf32>
    %c0_28 = arith.constant 0 : index
    %c0_29 = arith.constant 0 : index
    %31 = vector.load %arg4[%c0_28, %c0_29] : memref<14x28xf32, #tpu.memory_space<vmem>>, vector<14x28xf32>
    %cst_30 = arith.constant dense<0.000000e+00> : vector<14x168xf32>
    %32 = tpu.matmul %31, %30, %cst_30 {dimension_numbers = #tpu.dot_dimension_numbers<[1], [0], [0], [1], [0, 0, 1, 1], [], []>} : vector<14x28xf32>, vector<28x168xf32>, vector<14x168xf32> -> vector<14x168xf32>
    %c0_31 = arith.constant 0 : index
    %c0_32 = arith.constant 0 : index
    %33 = vector.load %arg5[%c0_31, %c0_32] : memref<14x28xf32, #tpu.memory_space<vmem>>, vector<14x28xf32>
    %cst_33 = arith.constant dense<0.000000e+00> : vector<14x168xf32>
    %34 = tpu.matmul %33, %30, %cst_33 {dimension_numbers = #tpu.dot_dimension_numbers<[1], [0], [0], [1], [0, 0, 1, 1], [], []>} : vector<14x28xf32>, vector<28x168xf32>, vector<14x168xf32> -> vector<14x168xf32>
    %35 = arith.maximumf %32, %34 : vector<14x168xf32>
    %c0_34 = arith.constant 0 : index
    %c0_35 = arith.constant 0 : index
    %36 = vector.load %arg6[%c0_34, %c0_35] : memref<168x84xf32, #tpu.memory_space<vmem>>, vector<168x84xf32>
    %cst_36 = arith.constant dense<0.000000e+00> : vector<14x84xf32>
    %37 = tpu.matmul %35, %36, %cst_36 {dimension_numbers = #tpu.dot_dimension_numbers<[1], [0], [0], [1], [0, 0, 1, 1], [], []>} : vector<14x168xf32>, vector<168x84xf32>, vector<14x84xf32> -> vector<14x84xf32>
    %c0_37 = arith.constant 0 : index
    %c0_38 = arith.constant 0 : index
    %38 = vector.load %arg7[%c0_37, %c0_38] : memref<168x84xf32, #tpu.memory_space<vmem>>, vector<168x84xf32>
    %cst_39 = arith.constant dense<0.000000e+00> : vector<14x84xf32>
    %39 = tpu.matmul %35, %38, %cst_39 {dimension_numbers = #tpu.dot_dimension_numbers<[1], [0], [0], [1], [0, 0, 1, 1], [], []>} : vector<14x168xf32>, vector<168x84xf32>, vector<14x84xf32> -> vector<14x84xf32>
    %40 = arith.maximumf %37, %39 : vector<14x84xf32>
    %c0_40 = arith.constant 0 : index
    %c0_41 = arith.constant 0 : index
    %41 = vector.load %arg21[%c0_40, %c0_41] : memref<14x84xf32, #tpu.memory_space<vmem>>, vector<14x84xf32>
    tpu.vector_store %arg21[%c0_40, %c0_41], %40 {strides = array<i32>} : memref<14x84xf32, #tpu.memory_space<vmem>>, vector<14x84xf32>,
    %cst_42 = arith.constant 0.000000e+00 : f32
    %42 = vector.broadcast %cst_42 : f32 to vector<10x160xf32>
    %c0_43 = arith.constant 0 : index
    %c0_44 = arith.constant 0 : index
    %43 = vector.load %arg21[%c0_43, %c0_44] : memref<14x84xf32, #tpu.memory_space<vmem>>, vector<10x84xf32>
    %c0_45 = arith.constant 0 : index
    %c0_46 = arith.constant 0 : index
    %c0_47 = arith.constant 0 : index
    %44 = vector.load %arg8[%c0_45, %c0_46, %c0_47] : memref<5x84x160xf32, #tpu.memory_space<vmem>>, vector<1x84x160xf32>
    %45 = vector.shape_cast %44 : vector<1x84x160xf32> to vector<84x160xf32>
    %cst_48 = arith.constant dense<0.000000e+00> : vector<10x160xf32>
    %46 = tpu.matmul %43, %45, %cst_48 {dimension_numbers = #tpu.dot_dimension_numbers<[1], [0], [0], [1], [0, 0, 1, 1], [], []>} : vector<10x84xf32>, vector<84x160xf32>, vector<10x160xf32> -> vector<10x160xf32>
    %47 = arith.addf %42, %46 : vector<10x160xf32>
    %c1_49 = arith.constant 1 : index
    %c0_50 = arith.constant 0 : index
    %48 = vector.load %arg21[%c1_49, %c0_50] : memref<14x84xf32, #tpu.memory_space<vmem>>, vector<10x84xf32>
    %c1_51 = arith.constant 1 : index
    %c0_52 = arith.constant 0 : index
    %c0_53 = arith.constant 0 : index
    %49 = vector.load %arg8[%c1_51, %c0_52, %c0_53] : memref<5x84x160xf32, #tpu.memory_space<vmem>>, vector<1x84x160xf32>
    %50 = vector.shape_cast %49 : vector<1x84x160xf32> to vector<84x160xf32>
    %cst_54 = arith.constant dense<0.000000e+00> : vector<10x160xf32>
    %51 = tpu.matmul %48, %50, %cst_54 {dimension_numbers = #tpu.dot_dimension_numbers<[1], [0], [0], [1], [0, 0, 1, 1], [], []>} : vector<10x84xf32>, vector<84x160xf32>, vector<10x160xf32> -> vector<10x160xf32>
    %52 = arith.addf %47, %51 : vector<10x160xf32>
    %c2_55 = arith.constant 2 : index
    %c0_56 = arith.constant 0 : index
    %53 = vector.load %arg21[%c2_55, %c0_56] : memref<14x84xf32, #tpu.memory_space<vmem>>, vector<10x84xf32>
    %c2_57 = arith.constant 2 : index
    %c0_58 = arith.constant 0 : index
    %c0_59 = arith.constant 0 : index
    %54 = vector.load %arg8[%c2_57, %c0_58, %c0_59] : memref<5x84x160xf32, #tpu.memory_space<vmem>>, vector<1x84x160xf32>
    %55 = vector.shape_cast %54 : vector<1x84x160xf32> to vector<84x160xf32>
    %cst_60 = arith.constant dense<0.000000e+00> : vector<10x160xf32>
    %56 = tpu.matmul %53, %55, %cst_60 {dimension_numbers = #tpu.dot_dimension_numbers<[1], [0], [0], [1], [0, 0, 1, 1], [], []>} : vector<10x84xf32>, vector<84x160xf32>, vector<10x160xf32> -> vector<10x160xf32>
    %57 = arith.addf %52, %56 : vector<10x160xf32>
    %c3_61 = arith.constant 3 : index
    %c0_62 = arith.constant 0 : index
    %58 = vector.load %arg21[%c3_61, %c0_62] : memref<14x84xf32, #tpu.memory_space<vmem>>, vector<10x84xf32>
    %c3_63 = arith.constant 3 : index
    %c0_64 = arith.constant 0 : index
    %c0_65 = arith.constant 0 : index
    %59 = vector.load %arg8[%c3_63, %c0_64, %c0_65] : memref<5x84x160xf32, #tpu.memory_space<vmem>>, vector<1x84x160xf32>
    %60 = vector.shape_cast %59 : vector<1x84x160xf32> to vector<84x160xf32>
    %cst_66 = arith.constant dense<0.000000e+00> : vector<10x160xf32>
    %61 = tpu.matmul %58, %60, %cst_66 {dimension_numbers = #tpu.dot_dimension_numbers<[1], [0], [0], [1], [0, 0, 1, 1], [], []>} : vector<10x84xf32>, vector<84x160xf32>, vector<10x160xf32> -> vector<10x160xf32>
    %62 = arith.addf %57, %61 : vector<10x160xf32>
    %c4_67 = arith.constant 4 : index
    %c0_68 = arith.constant 0 : index
    %63 = vector.load %arg21[%c4_67, %c0_68] : memref<14x84xf32, #tpu.memory_space<vmem>>, vector<10x84xf32>
    %c4_69 = arith.constant 4 : index
    %c0_70 = arith.constant 0 : index
    %c0_71 = arith.constant 0 : index
    %64 = vector.load %arg8[%c4_69, %c0_70, %c0_71] : memref<5x84x160xf32, #tpu.memory_space<vmem>>, vector<1x84x160xf32>
    %65 = vector.shape_cast %64 : vector<1x84x160xf32> to vector<84x160xf32>
    %cst_72 = arith.constant dense<0.000000e+00> : vector<10x160xf32>
    %66 = tpu.matmul %63, %65, %cst_72 {dimension_numbers = #tpu.dot_dimension_numbers<[1], [0], [0], [1], [0, 0, 1, 1], [], []>} : vector<10x84xf32>, vector<84x160xf32>, vector<10x160xf32> -> vector<10x160xf32>
    %67 = arith.addf %62, %66 : vector<10x160xf32>
    %c0_73 = arith.constant 0 : index
    %c0_74 = arith.constant 0 : index
    %68 = vector.load %arg9[%c0_73, %c0_74] : memref<1x160xf32, #tpu.memory_space<vmem>>, vector<1x160xf32>
    %69 = vector.broadcast %68 : vector<1x160xf32> to vector<10x160xf32>
    %70 = arith.addf %67, %69 : vector<10x160xf32>
    %cst_75 = arith.constant 0.000000e+00 : f32
    %71 = vector.broadcast %cst_75 : f32 to vector<10x160xf32>
    %72 = arith.maximumf %70, %71 : vector<10x160xf32>
    %c0_76 = arith.constant 0 : index
    %c0_77 = arith.constant 0 : index
    %73 = vector.load %arg10[%c0_76, %c0_77] : memref<5x10xf32, #tpu.memory_space<vmem>>, vector<5x10xf32>
    %cst_78 = arith.constant dense<0.000000e+00> : vector<5x160xf32>
    %74 = tpu.matmul %73, %72, %cst_78 {dimension_numbers = #tpu.dot_dimension_numbers<[1], [0], [0], [1], [0, 0, 1, 1], [], []>} : vector<5x10xf32>, vector<10x160xf32>, vector<5x160xf32> -> vector<5x160xf32>
    %c0_79 = arith.constant 0 : index
    %c0_80 = arith.constant 0 : index
    %75 = vector.load %arg11[%c0_79, %c0_80] : memref<5x10xf32, #tpu.memory_space<vmem>>, vector<5x10xf32>
    %cst_81 = arith.constant dense<0.000000e+00> : vector<5x160xf32>
    %76 = tpu.matmul %75, %72, %cst_81 {dimension_numbers = #tpu.dot_dimension_numbers<[1], [0], [0], [1], [0, 0, 1, 1], [], []>} : vector<5x10xf32>, vector<10x160xf32>, vector<5x160xf32> -> vector<5x160xf32>
    %77 = arith.maximumf %74, %76 : vector<5x160xf32>
    %c0_82 = arith.constant 0 : index
    %c0_83 = arith.constant 0 : index
    %78 = vector.load %arg12[%c0_82, %c0_83] : memref<160x80xf32, #tpu.memory_space<vmem>>, vector<160x80xf32>
    %cst_84 = arith.constant dense<0.000000e+00> : vector<5x80xf32>
    %79 = tpu.matmul %77, %78, %cst_84 {dimension_numbers = #tpu.dot_dimension_numbers<[1], [0], [0], [1], [0, 0, 1, 1], [], []>} : vector<5x160xf32>, vector<160x80xf32>, vector<5x80xf32> -> vector<5x80xf32>
    %c0_85 = arith.constant 0 : index
    %c0_86 = arith.constant 0 : index
    %80 = vector.load %arg13[%c0_85, %c0_86] : memref<160x80xf32, #tpu.memory_space<vmem>>, vector<160x80xf32>
    %cst_87 = arith.constant dense<0.000000e+00> : vector<5x80xf32>
    %81 = tpu.matmul %77, %80, %cst_87 {dimension_numbers = #tpu.dot_dimension_numbers<[1], [0], [0], [1], [0, 0, 1, 1], [], []>} : vector<5x160xf32>, vector<160x80xf32>, vector<5x80xf32> -> vector<5x80xf32>
    %82 = arith.maximumf %79, %81 : vector<5x80xf32>
    %c0_88 = arith.constant 0 : index
    %c0_89 = arith.constant 0 : index
    %83 = vector.load %arg22[%c0_88, %c0_89] : memref<5x80xf32, #tpu.memory_space<vmem>>, vector<5x80xf32>
    tpu.vector_store %arg22[%c0_88, %c0_89], %82 {strides = array<i32>} : memref<5x80xf32, #tpu.memory_space<vmem>>, vector<5x80xf32>,
    %cst_90 = arith.constant 0.000000e+00 : f32
    %84 = vector.broadcast %cst_90 : f32 to vector<1x128xf32>
    %c0_91 = arith.constant 0 : index
    %c0_92 = arith.constant 0 : index
    %85 = vector.load %arg22[%c0_91, %c0_92] : memref<5x80xf32, #tpu.memory_space<vmem>>, vector<1x80xf32>
    %c0_93 = arith.constant 0 : index
    %c0_94 = arith.constant 0 : index
    %c0_95 = arith.constant 0 : index
    %86 = vector.load %arg14[%c0_93, %c0_94, %c0_95] : memref<5x80x128xf32, #tpu.memory_space<vmem>>, vector<1x80x128xf32>
    %87 = vector.shape_cast %86 : vector<1x80x128xf32> to vector<80x128xf32>
    %cst_96 = arith.constant dense<0.000000e+00> : vector<1x128xf32>
    %88 = tpu.matmul %85, %87, %cst_96 {dimension_numbers = #tpu.dot_dimension_numbers<[1], [0], [0], [1], [0, 0, 1, 1], [], []>} : vector<1x80xf32>, vector<80x128xf32>, vector<1x128xf32> -> vector<1x128xf32>
    %89 = arith.addf %84, %88 : vector<1x128xf32>
    %c1_97 = arith.constant 1 : index
    %c0_98 = arith.constant 0 : index
    %90 = vector.load %arg22[%c1_97, %c0_98] : memref<5x80xf32, #tpu.memory_space<vmem>>, vector<1x80xf32>
    %c1_99 = arith.constant 1 : index
    %c0_100 = arith.constant 0 : index
    %c0_101 = arith.constant 0 : index
    %91 = vector.load %arg14[%c1_99, %c0_100, %c0_101] : memref<5x80x128xf32, #tpu.memory_space<vmem>>, vector<1x80x128xf32>
    %92 = vector.shape_cast %91 : vector<1x80x128xf32> to vector<80x128xf32>
    %cst_102 = arith.constant dense<0.000000e+00> : vector<1x128xf32>
    %93 = tpu.matmul %90, %92, %cst_102 {dimension_numbers = #tpu.dot_dimension_numbers<[1], [0], [0], [1], [0, 0, 1, 1], [], []>} : vector<1x80xf32>, vector<80x128xf32>, vector<1x128xf32> -> vector<1x128xf32>
    %94 = arith.addf %89, %93 : vector<1x128xf32>
    %c2_103 = arith.constant 2 : index
    %c0_104 = arith.constant 0 : index
    %95 = vector.load %arg22[%c2_103, %c0_104] : memref<5x80xf32, #tpu.memory_space<vmem>>, vector<1x80xf32>
    %c2_105 = arith.constant 2 : index
    %c0_106 = arith.constant 0 : index
    %c0_107 = arith.constant 0 : index
    %96 = vector.load %arg14[%c2_105, %c0_106, %c0_107] : memref<5x80x128xf32, #tpu.memory_space<vmem>>, vector<1x80x128xf32>
    %97 = vector.shape_cast %96 : vector<1x80x128xf32> to vector<80x128xf32>
    %cst_108 = arith.constant dense<0.000000e+00> : vector<1x128xf32>
    %98 = tpu.matmul %95, %97, %cst_108 {dimension_numbers = #tpu.dot_dimension_numbers<[1], [0], [0], [1], [0, 0, 1, 1], [], []>} : vector<1x80xf32>, vector<80x128xf32>, vector<1x128xf32> -> vector<1x128xf32>
    %99 = arith.addf %94, %98 : vector<1x128xf32>
    %c3_109 = arith.constant 3 : index
    %c0_110 = arith.constant 0 : index
    %100 = vector.load %arg22[%c3_109, %c0_110] : memref<5x80xf32, #tpu.memory_space<vmem>>, vector<1x80xf32>
    %c3_111 = arith.constant 3 : index
    %c0_112 = arith.constant 0 : index
    %c0_113 = arith.constant 0 : index
    %101 = vector.load %arg14[%c3_111, %c0_112, %c0_113] : memref<5x80x128xf32, #tpu.memory_space<vmem>>, vector<1x80x128xf32>
    %102 = vector.shape_cast %101 : vector<1x80x128xf32> to vector<80x128xf32>
    %cst_114 = arith.constant dense<0.000000e+00> : vector<1x128xf32>
    %103 = tpu.matmul %100, %102, %cst_114 {dimension_numbers = #tpu.dot_dimension_numbers<[1], [0], [0], [1], [0, 0, 1, 1], [], []>} : vector<1x80xf32>, vector<80x128xf32>, vector<1x128xf32> -> vector<1x128xf32>
    %104 = arith.addf %99, %103 : vector<1x128xf32>
    %c4_115 = arith.constant 4 : index
    %c0_116 = arith.constant 0 : index
    %105 = vector.load %arg22[%c4_115, %c0_116] : memref<5x80xf32, #tpu.memory_space<vmem>>, vector<1x80xf32>
    %c4_117 = arith.constant 4 : index
    %c0_118 = arith.constant 0 : index
    %c0_119 = arith.constant 0 : index
    %106 = vector.load %arg14[%c4_117, %c0_118, %c0_119] : memref<5x80x128xf32, #tpu.memory_space<vmem>>, vector<1x80x128xf32>
    %107 = vector.shape_cast %106 : vector<1x80x128xf32> to vector<80x128xf32>
    %cst_120 = arith.constant dense<0.000000e+00> : vector<1x128xf32>
    %108 = tpu.matmul %105, %107, %cst_120 {dimension_numbers = #tpu.dot_dimension_numbers<[1], [0], [0], [1], [0, 0, 1, 1], [], []>} : vector<1x80xf32>, vector<80x128xf32>, vector<1x128xf32> -> vector<1x128xf32>
    %109 = arith.addf %104, %108 : vector<1x128xf32>
    %c0_121 = arith.constant 0 : index
    %c0_122 = arith.constant 0 : index
    %110 = vector.load %arg15[%c0_121, %c0_122] : memref<1x128xf32, #tpu.memory_space<vmem>>, vector<1x128xf32>
    %111 = arith.addf %109, %110 : vector<1x128xf32>
    %cst_123 = arith.constant 0.000000e+00 : f32
    %112 = vector.broadcast %cst_123 : f32 to vector<1x128xf32>
    %113 = arith.maximumf %111, %112 : vector<1x128xf32>
    %c0_124 = arith.constant 0 : index
    %c0_125 = arith.constant 0 : index
    %114 = vector.load %arg16[%c0_124, %c0_125] : memref<128x128xf32, #tpu.memory_space<vmem>>, vector<128x128xf32>
    %cst_126 = arith.constant dense<0.000000e+00> : vector<1x128xf32>
    %115 = tpu.matmul %113, %114, %cst_126 {dimension_numbers = #tpu.dot_dimension_numbers<[1], [0], [0], [1], [0, 0, 1, 1], [], []>} : vector<1x128xf32>, vector<128x128xf32>, vector<1x128xf32> -> vector<1x128xf32>
    %c0_127 = arith.constant 0 : index
    %c0_128 = arith.constant 0 : index
    %116 = vector.load %arg17[%c0_127, %c0_128] : memref<1x128xf32, #tpu.memory_space<vmem>>, vector<1x128xf32>
    %117 = arith.addf %115, %116 : vector<1x128xf32>
    %cst_129 = arith.constant 0.000000e+00 : f32
    %118 = vector.broadcast %cst_129 : f32 to vector<1x128xf32>
    %119 = arith.maximumf %117, %118 : vector<1x128xf32>
    %c0_130 = arith.constant 0 : index
    %c0_131 = arith.constant 0 : index
    %120 = vector.load %arg18[%c0_130, %c0_131] : memref<128x128xf32, #tpu.memory_space<vmem>>, vector<128x128xf32>
    %cst_132 = arith.constant dense<0.000000e+00> : vector<1x128xf32>
    %121 = tpu.matmul %119, %120, %cst_132 {dimension_numbers = #tpu.dot_dimension_numbers<[1], [0], [0], [1], [0, 0, 1, 1], [], []>} : vector<1x128xf32>, vector<128x128xf32>, vector<1x128xf32> -> vector<1x128xf32>
    %c0_133 = arith.constant 0 : index
    %c0_134 = arith.constant 0 : index
    %122 = vector.load %arg19[%c0_133, %c0_134] : memref<1x128xf32, #tpu.memory_space<vmem>>, vector<1x128xf32>
    %123 = arith.addf %121, %122 : vector<1x128xf32>
    %124 = vector.shape_cast %123 : vector<1x128xf32> to vector<1x128xf32>
    %125 = vector.broadcast %124 : vector<1x128xf32> to vector<8x128xf32>
    %c0_135 = arith.constant 0 : index
    %c0_136 = arith.constant 0 : index
    %126 = vector.load %arg20[%c0_135, %c0_136] : memref<8x128xf32, #tpu.memory_space<vmem>>, vector<8x128xf32>
    tpu.vector_store %arg20[%c0_135, %c0_136], %125 {strides = array<i32>} : memref<8x128xf32, #tpu.memory_space<vmem>>, vector<8x128xf32>,
    return
  }
  func.func @transform_0(%arg0: i32) -> (i32, i32) {
    %c0_i32 = arith.constant 0 : i32
    %c0_i32_0 = arith.constant 0 : i32
    return %arg0, %c0_i32 : i32, i32
  }
  func.func @transform_1(%arg0: i32) -> (i32, i32, i32) {
    %c0_i32 = arith.constant 0 : i32
    %c0_i32_0 = arith.constant 0 : i32
    %c0_i32_1 = arith.constant 0 : i32
    %c0_i32_2 = arith.constant 0 : i32
    return %c0_i32, %c0_i32_0, %c0_i32_1 : i32, i32, i32
  }
  func.func @transform_2(%arg0: i32) -> (i32, i32) {
    %c0_i32 = arith.constant 0 : i32
    %c0_i32_0 = arith.constant 0 : i32
    %c0_i32_1 = arith.constant 0 : i32
    return %c0_i32, %c0_i32_0 : i32, i32
  }
  func.func @transform_3(%arg0: i32) -> (i32, i32) {
    %c0_i32 = arith.constant 0 : i32
    %c0_i32_0 = arith.constant 0 : i32
    %c0_i32_1 = arith.constant 0 : i32
    return %c0_i32, %c0_i32_0 : i32, i32
  }
  func.func @transform_4(%arg0: i32) -> (i32, i32) {
    %c0_i32 = arith.constant 0 : i32
    %c0_i32_0 = arith.constant 0 : i32
    %c0_i32_1 = arith.constant 0 : i32
    return %c0_i32, %c0_i32_0 : i32, i32
  }
  func.func @transform_5(%arg0: i32) -> (i32, i32) {
    %c0_i32 = arith.constant 0 : i32
    %c0_i32_0 = arith.constant 0 : i32
    %c0_i32_1 = arith.constant 0 : i32
    return %c0_i32, %c0_i32_0 : i32, i32
  }
  func.func @transform_6(%arg0: i32) -> (i32, i32) {
    %c0_i32 = arith.constant 0 : i32
    %c0_i32_0 = arith.constant 0 : i32
    %c0_i32_1 = arith.constant 0 : i32
    return %c0_i32, %c0_i32_0 : i32, i32
  }
  func.func @transform_7(%arg0: i32) -> (i32, i32, i32) {
    %c0_i32 = arith.constant 0 : i32
    %c0_i32_0 = arith.constant 0 : i32
    %c0_i32_1 = arith.constant 0 : i32
    %c0_i32_2 = arith.constant 0 : i32
    return %c0_i32, %c0_i32_0, %c0_i32_1 : i32, i32, i32
  }
  func.func @transform_8(%arg0: i32) -> (i32, i32) {
    %c0_i32 = arith.constant 0 : i32
    %c0_i32_0 = arith.constant 0 : i32
    %c0_i32_1 = arith.constant 0 : i32
    return %c0_i32, %c0_i32_0 : i32, i32
  }
  func.func @transform_9(%arg0: i32) -> (i32, i32) {
    %c0_i32 = arith.constant 0 : i32
    %c0_i32_0 = arith.constant 0 : i32
    %c0_i32_1 = arith.constant 0 : i32
    return %c0_i32, %c0_i32_0 : i32, i32
  }
  func.func @transform_10(%arg0: i32) -> (i32, i32) {
    %c0_i32 = arith.constant 0 : i32
    %c0_i32_0 = arith.constant 0 : i32
    %c0_i32_1 = arith.constant 0 : i32
    return %c0_i32, %c0_i32_0 : i32, i32
  }
  func.func @transform_11(%arg0: i32) -> (i32, i32) {
    %c0_i32 = arith.constant 0 : i32
    %c0_i32_0 = arith.constant 0 : i32
    %c0_i32_1 = arith.constant 0 : i32
    return %c0_i32, %c0_i32_0 : i32, i32
  }
  func.func @transform_12(%arg0: i32) -> (i32, i32) {
    %c0_i32 = arith.constant 0 : i32
    %c0_i32_0 = arith.constant 0 : i32
    %c0_i32_1 = arith.constant 0 : i32
    return %c0_i32, %c0_i32_0 : i32, i32
  }
  func.func @transform_13(%arg0: i32) -> (i32, i32, i32) {
    %c0_i32 = arith.constant 0 : i32
    %c0_i32_0 = arith.constant 0 : i32
    %c0_i32_1 = arith.constant 0 : i32
    %c0_i32_2 = arith.constant 0 : i32
    return %c0_i32, %c0_i32_0, %c0_i32_1 : i32, i32, i32
  }
  func.func @transform_14(%arg0: i32) -> (i32, i32) {
    %c0_i32 = arith.constant 0 : i32
    %c0_i32_0 = arith.constant 0 : i32
    %c0_i32_1 = arith.constant 0 : i32
    return %c0_i32, %c0_i32_0 : i32, i32
  }
  func.func @transform_15(%arg0: i32) -> (i32, i32) {
    %c0_i32 = arith.constant 0 : i32
    %c0_i32_0 = arith.constant 0 : i32
    %c0_i32_1 = arith.constant 0 : i32
    return %c0_i32, %c0_i32_0 : i32, i32
  }
  func.func @transform_16(%arg0: i32) -> (i32, i32) {
    %c0_i32 = arith.constant 0 : i32
    %c0_i32_0 = arith.constant 0 : i32
    %c0_i32_1 = arith.constant 0 : i32
    return %c0_i32, %c0_i32_0 : i32, i32
  }
  func.func @transform_17(%arg0: i32) -> (i32, i32) {
    %c0_i32 = arith.constant 0 : i32
    %c0_i32_0 = arith.constant 0 : i32
    %c0_i32_1 = arith.constant 0 : i32
    return %c0_i32, %c0_i32_0 : i32, i32
  }
  func.func @transform_18(%arg0: i32) -> (i32, i32) {
    %c0_i32 = arith.constant 0 : i32
    %c0_i32_0 = arith.constant 0 : i32
    %c0_i32_1 = arith.constant 0 : i32
    return %c0_i32, %c0_i32_0 : i32, i32
  }
  func.func @transform_19(%arg0: i32) -> (i32, i32) {
    %c0_i32 = arith.constant 0 : i32
    %c0_i32_0 = arith.constant 0 : i32
    return %arg0, %c0_i32 : i32, i32
  }
}

</mosaic_0001>

<bundles_post_ra>
// kernel: net_forward.1
= control target key start
LH: loop header
LB: loop body
LE: loop exit
PB: predicated region body
PF: predicated region fallthrough
CT: control target
= control target key end

     0   :  { %s5554_s0 = inlined_call_operand.vmem [shape: f32[64,96], index: 0, kind: input, shape index: {}]   ;;  %s5555_s1 = inlined_call_operand.vmem [shape: f32[5,96,168], index: 1, kind: input, shape index: {}]   ;;  %s5556_s2 = inlined_call_operand.vmem [shape: f32[1,168], index: 2, kind: input, shape index: {}]   ;;  %s5557_s3 = inlined_call_operand.vmem [shape: f32[14,28], index: 3, kind: input, shape index: {}]   ;;  %s5558_s4 = inlined_call_operand.vmem [shape: f32[14,28], index: 4, kind: input, shape index: {}]   ;;  %s5559_s5 = inlined_call_operand.vmem [shape: f32[168,84], index: 5, kind: input, shape index: {}]   ;;  %s5560_s6 = inlined_call_operand.vmem [shape: f32[168,84], index: 6, kind: input, shape index: {}]   ;;  %s5561_s7 = inlined_call_operand.vmem [shape: f32[5,84,160], index: 7, kind: input, shape index: {}]   ;;  %s5562_s8 = inlined_call_operand.vmem [shape: f32[1,160], index: 8, kind: input, shape index: {}]   ;;  %s5563_s9 = inlined_call_operand.vmem [shape: f32[5,10], index: 9, kind: input, shape index: {}]   ;;  %s5564_s10 = inlined_call_operand.vmem [shape: f32[5,10], index: 10, kind: input, shape index: {}]   ;;  %s5565_s11 = inlined_call_operand.vmem [shape: f32[160,80], index: 11, kind: input, shape index: {}]   ;;  %s5566_s12 = inlined_call_operand.vmem [shape: f32[160,80], index: 12, kind: input, shape index: {}]   ;;  %s5567_s13 = inlined_call_operand.vmem [shape: f32[5,80,128], index: 13, kind: input, shape index: {}]   ;;  %s5568_s14 = inlined_call_operand.vmem [shape: f32[1,128], index: 14, kind: input, shape index: {}]   ;;  %s5569_s15 = inlined_call_operand.vmem [shape: f32[128,128], index: 15, kind: input, shape index: {}]   ;;  %s5570_s16 = inlined_call_operand.vmem [shape: f32[1,128], index: 16, kind: input, shape index: {}]   ;;  %s5571_s17 = inlined_call_operand.vmem [shape: f32[128,128], index: 17, kind: input, shape index: {}]   ;;  %s5572_s18 = inlined_call_operand.vmem [shape: f32[1,128], index: 18, kind: input, shape index: {}]   ;;  %s5573_s19 = inlined_call_operand.vmem [shape: f32[16,128], index: 19, kind: output, shape index: {}]  }
   0x1   :  { %5577 = sst [smem:[#allocation5_spill]] %s5554_s0  ;;  %s3997_s0 = smov 0  }
   0x2   :  { %5578 = sst [smem:[#allocation6_spill]] %s5555_s1 }
   0x3   :  { %5579 = sst [smem:[#allocation7_spill]] %s5556_s2 }
   0x4   :  { %5580 = sst [smem:[#allocation8_spill]] %s5557_s3 }
   0x5 LB: > { %5581 = sst [smem:[#allocation4_spill]] %s3893_s0  ;;  %s4003_s30 = sadd.s32 4294967295, %s3893_s0   ;;  %s3893_s0 = sphi %s3997_s0, %s29_s0  }
   0x6   : > { %p3308_p0 = scmp.ge.s32.totalorder %s3893_s0, 1  ;;  %p538_p1 = scmp.lt.s32.totalorder %s3893_s0, 3 }
   0x8   : > { %p539_p2 = pnand %p3308_p0, %p538_p1 }
   0x9   : > { %s5582_s1 = sld [smem:[#allocation6_spill]] (!%p539_p2)  ;;  %s3309_s20 = sshll.u32 (!%p539_p2), %s4003_s30, 2 }
   0xa   : > { %542 = sbr.rel (%p539_p2) target bundleno = 2024 (0x7e8), region = 96  ;;  %p4082_p3 = scmp.lt.s32.totalorder (!%p539_p2), %s3309_s20, 7 }
   0xb   : > { %s5584_s3 = sld [smem:[#allocation5_spill]] (!%p539_p2)  ;;  %p599_p4 = scmp.lt.s32.totalorder (!%p539_p2), %s4003_s30, 1 }
   0xc   : > { %s5585_s22 = sld [smem:[#allocation7_spill]] (!%p539_p2) }
   0xd   : > { %s5586_s25 = sld [smem:[#allocation8_spill]] (!%p539_p2) }
   0xf   : > { %v3335_v0 = vld [vmem:[%s5582_s1 + $0x178] sm:$0xff]  ;;  %v3334_v2 = vld [vmem:[%s5582_s1 + $0x170] sm:$0xff]  ;;  %v3333_v4 = vld [vmem:[%s5582_s1 + $0x168] sm:$0xff]  ;;  %s5589_s20 = smov (!%p4082_p3, %s3309_s20), 7  ;;  %vm660_vm0 = vcmask 785408   ;;  %v3895_v50 = vmov 0.0  }
  0x10   : > { %v630_v1 = vld [vmem:[%s5582_s1 + $0xb8] sm:$0xff]  ;;  %681 = vmatprep.subr.mxu0 %v3335_v0  ;;  %v629_v3 = vld [vmem:[%s5582_s1 + $0xb0] sm:$0xff]  ;;  %v628_v5 = vld [vmem:[%s5582_s1 + $0xa8] sm:$0xff]  ;;  %s3310_s23 = sshll.u32 %s5589_s20, 3  ;;  %737 = vmatprep.mubr.f32.mxu0 %v3895_v50  ;;  %vm1314_vm1 = vcmask 1043456   ;;  %vm1307_vm2 = vcmask 228352  }
  0x11   : > { %782 = vmatprep.subr.mxu1 %v630_v1  ;;  %682 = vmatpush1.msra.mxu0 %v3334_v2  ;;  %v3332_v6 = vld [vmem:[%s5582_s1 + $0x160] sm:$0xff]  ;;  %v3331_v8 = vld [vmem:[%s5582_s1 + $0x158] sm:$0xff]  ;;  %v3330_v10 = vld [vmem:[%s5582_s1 + $0x150] sm:$0xff]  ;;  %s4162_s0 = scalar_lea.vmem %s5584_s3, %s3310_s23  ;;  %vm1508_vm3 = vcmask 326656   ;;  %vm1688_vm4 = vcmask 687104   ;;  %vm1690_vm5 = vcmask 685056  }
  0x12   : > { %783 = vmatpush1.msra.mxu1 %v629_v3  ;;  %v627_v7 = vld [vmem:[%s5582_s1 + $0xa0] sm:$0xff]  ;;  %683 = vmatprep.subr.mxu0 %v3333_v4  ;;  %v626_v9 = vld [vmem:[%s5582_s1 + $0x98] sm:$0xff]  ;;  %v625_v11 = vld [vmem:[%s5582_s1 + $0x90] sm:$0xff]  ;;  %vm2298_vm6 = vcmask 1041408   ;;  %vm2294_vm7 = vcmask 80896   ;;  %vm2473_vm8 = vcmask 261120  }
  0x13   : > { %784 = vmatprep.subr.mxu1 %v628_v5  ;;  %684 = vmatpush1.msra.mxu0 %v3332_v6  ;;  %v3329_v12 = vld [vmem:[%s5582_s1 + $0x148] sm:$0xff]  ;;  %v3328_v14 = vld [vmem:[%s5582_s1 + $0x140] sm:$0xff]  ;;  %v3327_v16 = vld [vmem:[%s5582_s1 + $0x138] sm:$0xff]  ;;  %vm3896_vm9 = vmmov 0   ;;  %vm2638_vm10 = vcmask 651264   ;;  %vm2663_vm11 = vcmask 654336  }
  0x14   : > { %785 = vmatpush1.msra.mxu1 %v627_v7  ;;  %v624_v13 = vld [vmem:[%s5582_s1 + $0x88] sm:$0xff]  ;;  %685 = vmatprep.subr.mxu0 %v3331_v8  ;;  %v623_v15 = vld [vmem:[%s5582_s1 + $0x80] sm:$0xff]  ;;  %v622_v17 = vld [vmem:[%s5582_s1 + $0x78] sm:$0xff]  ;;  %s5591_s30 = smov (!%p599_p4, %s4003_s30), 1 }
  0x15   : > { %786 = vmatprep.subr.mxu1 %v626_v9  ;;  %686 = vmatpush1.msra.mxu0 %v3330_v10  ;;  %v3326_v18 = vld [vmem:[%s5582_s1 + $0x130] sm:$0xff]  ;;  %v3325_v20 = vld [vmem:[%s5582_s1 + $0x128] sm:$0xff]  ;;  %v3324_v22 = vld [vmem:[%s5582_s1 + $0x120] sm:$0xff]  ;;  %s3311_s24 = sshll.u32 %s5591_s30, 3 }
  0x16   : > { %787 = vmatpush1.msra.mxu1 %v625_v11  ;;  %687 = vmatprep.subr.mxu0 %v3329_v12  ;;  %v621_v19 = vld [vmem:[%s5582_s1 + $0x70] sm:$0xff]  ;;  %v620_v21 = vld [vmem:[%s5582_s1 + $0x68] sm:$0xff]  ;;  %v619_v23 = vld [vmem:[%s5582_s1 + $0x60] sm:$0xff]  ;;  %s602_s26 = scalar_lea.vmem %s5573_s19, %s3311_s24 }
  0x17   : > { %788 = vmatprep.subr.mxu1 %v624_v13  ;;  %688 = vmatpush1.msra.mxu0 %v3328_v14  ;;  %v3323_v24 = vld [vmem:[%s5582_s1 + $0x118] sm:$0xff]  ;;  %v3322_v26 = vld [vmem:[%s5582_s1 + $0x110] sm:$0xff]  ;;  %v3321_v28 = vld [vmem:[%s5582_s1 + $0x108] sm:$0xff] }
  0x18   : > { %789 = vmatpush1.msra.mxu1 %v623_v15  ;;  %689 = vmatprep.subr.mxu0 %v3327_v16  ;;  %v618_v25 = vld [vmem:[%s5582_s1 + $0x58] sm:$0xff]  ;;  %v617_v27 = vld [vmem:[%s5582_s1 + $0x50] sm:$0xff]  ;;  %v616_v29 = vld [vmem:[%s5582_s1 + $0x48] sm:$0xff] }
  0x19   : > { %790 = vmatprep.subr.mxu1 %v622_v17  ;;  %690 = vmatpush1.msra.mxu0 %v3326_v18  ;;  %v3320_v30 = vld [vmem:[%s5582_s1 + $0x100] sm:$0xff]  ;;  %v3319_v32 = vld [vmem:[%s5582_s1 + $0xf8] sm:$0xff]  ;;  %v3318_v34 = vld [vmem:[%s5582_s1 + $0xf0] sm:$0xff] }
  0x1a   : > { %791 = vmatpush1.msra.mxu1 %v621_v19  ;;  %691 = vmatprep.subr.mxu0 %v3325_v20  ;;  %v615_v31 = vld [vmem:[%s5582_s1 + $0x40] sm:$0xff]  ;;  %v614_v33 = vld [vmem:[%s5582_s1 + $0x38] sm:$0xff]  ;;  %v613_v35 = vld [vmem:[%s5582_s1 + $0x30] sm:$0xff] }
  0x1b   : > { %792 = vmatprep.subr.mxu1 %v620_v21  ;;  %692 = vmatpush1.msra.mxu0 %v3324_v22  ;;  %v3317_v36 = vld [vmem:[%s5582_s1 + $0xe8] sm:$0xff]  ;;  %v3316_v38 = vld [vmem:[%s5582_s1 + $0xe0] sm:$0xff]  ;;  %v3315_v40 = vld [vmem:[%s5582_s1 + $0xd8] sm:$0xff] }
  0x1c   : > { %793 = vmatpush1.msra.mxu1 %v619_v23  ;;  %693 = vmatprep.subr.mxu0 %v3323_v24  ;;  %v612_v37 = vld [vmem:[%s5582_s1 + $0x28] sm:$0xff]  ;;  %v611_v39 = vld [vmem:[%s5582_s1 + $0x20] sm:$0xff]  ;;  %v610_v41 = vld [vmem:[%s5582_s1 + $0x18] sm:$0xff] }
  0x1d   : > { %794 = vmatprep.subr.mxu1 %v618_v25  ;;  %694 = vmatpush1.msra.mxu0 %v3322_v26  ;;  %v3314_v42 = vld [vmem:[%s5582_s1 + $0xd0] sm:$0xff]  ;;  %v3313_v44 = vld [vmem:[%s5582_s1 + $0xc8] sm:$0xff]  ;;  %v3312_v46 = vld [vmem:[%s5582_s1 + $0xc0] sm:$0xff] }
  0x1e   : > { %795 = vmatpush1.msra.mxu1 %v617_v27  ;;  %695 = vmatprep.subr.mxu0 %v3321_v28  ;;  %v609_v43 = vld [vmem:[%s5582_s1 + $0x10] sm:$0xff]  ;;  %v608_v45 = vld [vmem:[%s5582_s1 + $0x8] sm:$0xff]  ;;  %v607_v47 = vld [vmem:[%s5582_s1] sm:$0xff] }
  0x1f   : > { %796 = vmatprep.subr.mxu1 %v616_v29  ;;  %696 = vmatpush1.msra.mxu0 %v3320_v30  ;;  %v631_v48 = vld [vmem:[%s4162_s0 + $0x1] sm:$0xff]  ;;  %v3367_v51 = vld [vmem:[%s5582_s1 + $0x238] sm:$0xff]  ;;  %v3366_v53 = vld [vmem:[%s5582_s1 + $0x230] sm:$0xff] }
  0x20   : > { %797 = vmatpush1.msra.mxu1 %v615_v31  ;;  %697 = vmatprep.subr.mxu0 %v3319_v32  ;;  %v603_v49 = vld [vmem:[%s4162_s0] sm:$0xff]  ;;  %v3395_v52 = vld [vmem:[%s5582_s1 + $0x2f8] sm:$0xff]  ;;  %v3394_v54 = vld [vmem:[%s5582_s1 + $0x2f0] sm:$0xff] }
  0x21   : > { %798 = vmatprep.subr.mxu1 %v614_v33  ;;  %698 = vmatpush1.msra.mxu0 %v3318_v34  ;;  %v3365_v55 = vld [vmem:[%s5582_s1 + $0x228] sm:$0xff]  ;;  %v3364_v57 = vld [vmem:[%s5582_s1 + $0x220] sm:$0xff]  ;;  %v3363_v59 = vld [vmem:[%s5582_s1 + $0x218] sm:$0xff] }
  0x22   : > { %799 = vmatpush1.msra.mxu1 %v613_v35  ;;  %699 = vmatprep.subr.mxu0 %v3317_v36  ;;  %v3393_v56 = vld [vmem:[%s5582_s1 + $0x2e8] sm:$0xff]  ;;  %v3392_v58 = vld [vmem:[%s5582_s1 + $0x2e0] sm:$0xff]  ;;  %v3391_v60 = vld [vmem:[%s5582_s1 + $0x2d8] sm:$0xff] }
  0x23   : > { %800 = vmatprep.subr.mxu1 %v612_v37  ;;  %700 = vmatpush1.msra.mxu0 %v3316_v38  ;;  %v3362_v61 = vld [vmem:[%s5582_s1 + $0x210] sm:$0xff]  ;;  %v3361_v63 = vld [vmem:[%s5582_s1 + $0x208] sm:$0xff]  ;;  %v3360_v1 = vld [vmem:[%s5582_s1 + $0x200] sm:$0xff] }
  0x24   : > { %801 = vmatpush1.msra.mxu1 %v611_v39  ;;  %701 = vmatprep.subr.mxu0 %v3315_v40  ;;  %v3390_v62 = vld [vmem:[%s5582_s1 + $0x2d0] sm:$0xff]  ;;  %v3389_v0 = vld [vmem:[%s5582_s1 + $0x2c8] sm:$0xff]  ;;  %v3388_v2 = vld [vmem:[%s5582_s1 + $0x2c0] sm:$0xff] }
  0x25   : > { %802 = vmatprep.subr.mxu1 %v610_v41  ;;  %702 = vmatpush1.msra.mxu0 %v3314_v42  ;;  %v3359_v3 = vld [vmem:[%s5582_s1 + $0x1f8] sm:$0xff]  ;;  %v3358_v4 = vld [vmem:[%s5582_s1 + $0x1f0] sm:$0xff]  ;;  %v3357_v5 = vld [vmem:[%s5582_s1 + $0x1e8] sm:$0xff] }
  0x26   : > { %803 = vmatpush1.msra.mxu1 %v609_v43  ;;  %703 = vmatprep.subr.mxu0 %v3313_v44  ;;  %v3387_v6 = vld [vmem:[%s5582_s1 + $0x2b8] sm:$0xff]  ;;  %v632_v7 = vld [vmem:[%s4162_s0 + $0x9] sm:$0xff]  ;;  %v3356_v9 = vld [vmem:[%s5582_s1 + $0x1e0] sm:$0xff] }
  0x27   : > { %804 = vmatprep.subr.mxu1 %v608_v45  ;;  %704 = vmatpush1.msra.mxu0 %v3312_v46  ;;  %v604_v8 = vld [vmem:[%s4162_s0 + $0x8] sm:$0xff]  ;;  %v3386_v10 = vld [vmem:[%s5582_s1 + $0x2b0] sm:$0xff]  ;;  %v3355_v11 = vld [vmem:[%s5582_s1 + $0x1d8] sm:$0xff] }
  0x28   : > { %805 = vmatpush1.msra.mxu1 %v607_v47  ;;  %838 = vmatprep.mubr.f32.mxu1 %v3895_v50  ;;  %v3385_v12 = vld [vmem:[%s5582_s1 + $0x2a8] sm:$0xff]  ;;  %v3354_v13 = vld [vmem:[%s5582_s1 + $0x1d0] sm:$0xff]  ;;  %v3384_v14 = vld [vmem:[%s5582_s1 + $0x2a0] sm:$0xff] }
  0x29   : > { %3336 = vmatmul.mubr.msk.f32.vlgmr.msra.gmra.mxu0 %vm660_vm0, %v631_v48  ;;  %3340 = vmatmul.mubr.msk.f32.vlgmr.msra.gmra.mxu1 %vm660_vm0, %v603_v49  ;;  %v3353_v15 = vld [vmem:[%s5582_s1 + $0x1c8] sm:$0xff]  ;;  %v3383_v16 = vld [vmem:[%s5582_s1 + $0x298] sm:$0xff]  ;;  %v605_v18 = vld [vmem:[%s4162_s0 + $0x10] sm:$0xff] }
  0x2a   : > { %912 = vmatprep.subr.mxu0 %v3367_v51  ;;  %1050 = vmatprep.subr.mxu1 %v3395_v52  ;;  %v633_v17 = vld [vmem:[%s4162_s0 + $0x11] sm:$0xff]  ;;  %v3352_v19 = vld [vmem:[%s5582_s1 + $0x1c0] sm:$0xff]  ;;  %v3381_v22 = vld [vmem:[%s5582_s1 + $0x288] sm:$0xff] }
  0x2b   : > { %913 = vmatpush1.msra.mxu0 %v3366_v53  ;;  %1051 = vmatpush1.msra.mxu1 %v3394_v54  ;;  %v3382_v20 = vld [vmem:[%s5582_s1 + $0x290] sm:$0xff]  ;;  %v3351_v21 = vld [vmem:[%s5582_s1 + $0x1b8] sm:$0xff]  ;;  %v3380_v24 = vld [vmem:[%s5582_s1 + $0x280] sm:$0xff] }
  0x2c   : > { %914 = vmatprep.subr.mxu0 %v3365_v55  ;;  %1052 = vmatprep.subr.mxu1 %v3393_v56  ;;  %v3350_v23 = vld [vmem:[%s5582_s1 + $0x1b0] sm:$0xff]  ;;  %v3349_v25 = vld [vmem:[%s5582_s1 + $0x1a8] sm:$0xff]  ;;  %v3379_v26 = vld [vmem:[%s5582_s1 + $0x278] sm:$0xff] }
  0x2d   : > { %915 = vmatpush1.msra.mxu0 %v3364_v57  ;;  %1053 = vmatpush1.msra.mxu1 %v3392_v58  ;;  %v634_v27 = vld [vmem:[%s4162_s0 + $0x19] sm:$0xf]  ;;  %v3348_v29 = vld [vmem:[%s5582_s1 + $0x1a0] sm:$0xff]  ;;  %v3378_v30 = vld [vmem:[%s5582_s1 + $0x270] sm:$0xff] }
  0x2e   : > { %916 = vmatprep.subr.mxu0 %v3363_v59  ;;  %1054 = vmatprep.subr.mxu1 %v3391_v60  ;;  %v606_v28 = vld [vmem:[%s4162_s0 + $0x18] sm:$0xf]  ;;  %v3377_v32 = vld [vmem:[%s5582_s1 + $0x268] sm:$0xff]  ;;  %v3346_v33 = vld [vmem:[%s5582_s1 + $0x190] sm:$0xff] }
  0x2f   : > { %917 = vmatpush1.msra.mxu0 %v3362_v61  ;;  %1055 = vmatpush1.msra.mxu1 %v3390_v62  ;;  %v3347_v31 = vld [vmem:[%s5582_s1 + $0x198] sm:$0xff]  ;;  %v3376_v34 = vld [vmem:[%s5582_s1 + $0x260] sm:$0xff]  ;;  %v3345_v35 = vld [vmem:[%s5582_s1 + $0x188] sm:$0xff] }
  0x30   : > { %918 = vmatprep.subr.mxu0 %v3361_v63  ;;  %1056 = vmatprep.subr.mxu1 %v3389_v0  ;;  %v3375_v36 = vld [vmem:[%s5582_s1 + $0x258] sm:$0xff]  ;;  %v3344_v37 = vld [vmem:[%s5582_s1 + $0x180] sm:$0xff]  ;;  %v3374_v38 = vld [vmem:[%s5582_s1 + $0x250] sm:$0xff] }
  0x31   : > { %919 = vmatpush1.msra.mxu0 %v3360_v1  ;;  %1057 = vmatpush1.msra.mxu1 %v3388_v2  ;;  %v863_v39 = vld [vmem:[%s4162_s0 + $0x2] sm:$0xff]  ;;  %v3423_v41 = vld [vmem:[%s5582_s1 + $0x3b8] sm:$0xff]  ;;  %v3422_v43 = vld [vmem:[%s5582_s1 + $0x3b0] sm:$0xff] }
  0x32   : > { %920 = vmatprep.subr.mxu0 %v3359_v3  ;;  %743 = vmatprep.mubr.f32.mxu0 %v3895_v50  ;;  %v3373_v40 = vld [vmem:[%s5582_s1 + $0x248] sm:$0xff]  ;;  %v3372_v42 = vld [vmem:[%s5582_s1 + $0x240] sm:$0xff]  ;;  %v3419_v48 = vld [vmem:[%s5582_s1 + $0x398] sm:$0xff] }
  0x33   : > { %921 = vmatpush1.msra.mxu0 %v3358_v4  ;;  %844 = vmatprep.mubr.f32.mxu1 %v3895_v50  ;;  %v1001_v44 = vld [vmem:[%s4162_s0 + $0x3] sm:$0xff]  ;;  %v3418_v49 = vld [vmem:[%s5582_s1 + $0x390] sm:$0xff]  ;;  %v3415_v55 = vld [vmem:[%s5582_s1 + $0x378] sm:$0xff] }
  0x34   : > { %922 = vmatprep.subr.mxu0 %v3357_v5  ;;  %1058 = vmatprep.subr.mxu1 %v3387_v6  ;;  %v3421_v45 = vld [vmem:[%s5582_s1 + $0x3a8] sm:$0xff]  ;;  %v3420_v46 = vld [vmem:[%s5582_s1 + $0x3a0] sm:$0xff]  ;;  %v865_v54 = vld [vmem:[%s4162_s0 + $0x12] sm:$0xff] }
  0x35   : > { %3337 = vmatmul.mubr.msk.f32.gmra.mxu0 %vm660_vm0, %v632_v7  ;;  %3341 = vmatmul.mubr.msk.f32.gmra.mxu1 %vm660_vm0, %v604_v8  ;;  %v864_v47 = vld [vmem:[%s4162_s0 + $0xa] sm:$0xff]  ;;  %v3416_v53 = vld [vmem:[%s5582_s1 + $0x380] sm:$0xff]  ;;  %v1003_v57 = vld [vmem:[%s4162_s0 + $0x13] sm:$0xff] }
  0x36   : > { %923 = vmatpush1.msra.mxu0 %v3356_v9  ;;  %1059 = vmatpush1.msra.mxu1 %v3386_v10  ;;  %v1002_v51 = vld [vmem:[%s4162_s0 + $0xb] sm:$0xff]  ;;  %v3412_v59 = vld [vmem:[%s5582_s1 + $0x360] sm:$0xff]  ;;  %v866_v60 = vld [vmem:[%s4162_s0 + $0x1a] sm:$0xf] }
  0x37   : > { %924 = vmatprep.subr.mxu0 %v3355_v11  ;;  %1060 = vmatprep.subr.mxu1 %v3385_v12  ;;  %v3417_v52 = vld [vmem:[%s5582_s1 + $0x388] sm:$0xff]  ;;  %v3414_v56 = vld [vmem:[%s5582_s1 + $0x370] sm:$0xff]  ;;  %v3411_v61 = vld [vmem:[%s5582_s1 + $0x358] sm:$0xff] }
  0x38   : > { %925 = vmatpush1.msra.mxu0 %v3354_v13  ;;  %1061 = vmatpush1.msra.mxu1 %v3384_v14  ;;  %v3413_v58 = vld [vmem:[%s5582_s1 + $0x368] sm:$0xff]  ;;  %v3410_v62 = vld [vmem:[%s5582_s1 + $0x350] sm:$0xff]  ;;  %v1004_v63 = vld [vmem:[%s4162_s0 + $0x1b] sm:$0xf] }
  0x39   : > { %749 = vmatprep.mubr.f32.mxu0 %v3895_v50  ;;  %850 = vmatprep.mubr.f32.mxu1 %v3895_v50  ;;  %v3409_v0 = vld [vmem:[%s5582_s1 + $0x348] sm:$0xff]  ;;  %v3408_v1 = vld [vmem:[%s5582_s1 + $0x340] sm:$0xff]  ;;  %v3407_v2 = vld [vmem:[%s5582_s1 + $0x338] sm:$0xff] }
  0x3a   : > { %926 = vmatprep.subr.mxu0 %v3353_v15  ;;  %1062 = vmatprep.subr.mxu1 %v3383_v16  ;;  %v3406_v3 = vld [vmem:[%s5582_s1 + $0x330] sm:$0xff]  ;;  %v3405_v4 = vld [vmem:[%s5582_s1 + $0x328] sm:$0xff]  ;;  %v3404_v5 = vld [vmem:[%s5582_s1 + $0x320] sm:$0xff] }
  0x3b   : > { %3338 = vmatmul.mubr.msk.f32.gmra.mxu0 %vm660_vm0, %v633_v17  ;;  %3342 = vmatmul.mubr.msk.f32.gmra.mxu1 %vm660_vm0, %v605_v18  ;;  %v3403_v6 = vld [vmem:[%s5582_s1 + $0x318] sm:$0xff]  ;;  %v3402_v7 = vld [vmem:[%s5582_s1 + $0x310] sm:$0xff]  ;;  %v3401_v8 = vld [vmem:[%s5582_s1 + $0x308] sm:$0xff] }
  0x3c   : > { %927 = vmatpush1.msra.mxu0 %v3352_v19  ;;  %1063 = vmatpush1.msra.mxu1 %v3382_v20  ;;  %v3400_v9 = vld [vmem:[%s5582_s1 + $0x300] sm:$0xff]  ;;  %v1140_v11 = vld [vmem:[%s4162_s0 + $0xc] sm:$0xff]  ;;  %v1141_v12 = vld [vmem:[%s4162_s0 + $0x14] sm:$0xff] }
  0x3d   : > { %928 = vmatprep.subr.mxu0 %v3351_v21  ;;  %1064 = vmatprep.subr.mxu1 %v3381_v22  ;;  %v1139_v10 = vld [vmem:[%s4162_s0 + $0x4] sm:$0xff]  ;;  %v1142_v13 = vld [vmem:[%s4162_s0 + $0x1c] sm:$0xf]  ;;  %v1501_v15 = vld [vmem:[%s5559_s5 + $0x70] sm:$0xff] }
  0x3e   : > { %929 = vmatpush1.msra.mxu0 %v3350_v23  ;;  %1065 = vmatpush1.msra.mxu1 %v3380_v24  ;;  %v1502_v14 = vld [vmem:[%s5559_s5 + $0x78] sm:$0xff]  ;;  %v1500_v16 = vld [vmem:[%s5559_s5 + $0x68] sm:$0xff]  ;;  %v1499_v17 = vld [vmem:[%s5559_s5 + $0x60] sm:$0xff] }
  0x3f   : > { %755 = vmatprep.mubr.f32.mxu0 %v3895_v50  ;;  %856 = vmatprep.mubr.f32.mxu1 %v3895_v50  ;;  %v1498_v18 = vld [vmem:[%s5559_s5 + $0x58] sm:$0xff]  ;;  %v1497_v19 = vld [vmem:[%s5559_s5 + $0x50] sm:$0xff]  ;;  %v1496_v20 = vld [vmem:[%s5559_s5 + $0x48] sm:$0xff] }
  0x40   : > { %930 = vmatprep.subr.mxu0 %v3349_v25  ;;  %1066 = vmatprep.subr.mxu1 %v3379_v26  ;;  %v1495_v21 = vld [vmem:[%s5559_s5 + $0x40] sm:$0xff]  ;;  %v1494_v22 = vld [vmem:[%s5559_s5 + $0x38] sm:$0xff]  ;;  %v1493_v23 = vld [vmem:[%s5559_s5 + $0x30] sm:$0xff] }
  0x41   : > { %3339 = vmatmul.mubr.msk.f32.gmra.mxu0 %vm660_vm0, %v634_v27  ;;  %3343 = vmatmul.mubr.msk.f32.gmra.mxu1 %vm660_vm0, %v606_v28  ;;  %v1492_v24 = vld [vmem:[%s5559_s5 + $0x28] sm:$0xff]  ;;  %v1491_v25 = vld [vmem:[%s5559_s5 + $0x20] sm:$0xff]  ;;  %v1490_v26 = vld [vmem:[%s5559_s5 + $0x18] sm:$0xff] }
  0x42   : > { %931 = vmatpush1.msra.mxu0 %v3348_v29  ;;  %1067 = vmatpush1.msra.mxu1 %v3378_v30  ;;  %v1489_v27 = vld [vmem:[%s5559_s5 + $0x10] sm:$0xff] }
  0x43   : > { %932 = vmatprep.subr.mxu0 %v3347_v31  ;;  %1068 = vmatprep.subr.mxu1 %v3377_v32 }
  0x44   : > { %933 = vmatpush1.msra.mxu0 %v3346_v33  ;;  %1069 = vmatpush1.msra.mxu1 %v3376_v34 }
  0x45   : > { %934 = vmatprep.subr.mxu0 %v3345_v35  ;;  %1070 = vmatprep.subr.mxu1 %v3375_v36 }
  0x46   : > { %935 = vmatpush1.msra.mxu0 %v3344_v37  ;;  %968 = vmatprep.mubr.f32.mxu0 %v3895_v50 }
  0x47   : > { %1071 = vmatpush1.msra.mxu1 %v3374_v38  ;;  %3368 = vmatmul.mubr.msk.f32.vlgmr.msra.gmra.mxu0 %vm660_vm0, %v863_v39 }
  0x48   : > { %1072 = vmatprep.subr.mxu1 %v3373_v40  ;;  %1188 = vmatprep.subr.mxu0 %v3423_v41 }
  0x49   : > { %1073 = vmatpush1.msra.mxu1 %v3372_v42  ;;  %1106 = vmatprep.mubr.f32.mxu1 %v3895_v50 }
  0x4a   : > { %1189 = vmatpush1.msra.mxu0 %v3422_v43  ;;  %3396 = vmatmul.mubr.msk.f32.vlgmr.msra.gmra.mxu1 %vm660_vm0, %v1001_v44 }
  0x4b   : > { %1190 = vmatprep.subr.mxu0 %v3421_v45  ;;  %974 = vmatprep.mubr.f32.mxu0 %v3895_v50 }
  0x4c   : > { %1191 = vmatpush1.msra.mxu0 %v3420_v46  ;;  %1112 = vmatprep.mubr.f32.mxu1 %v3895_v50 }
  0x4d   : > { %3369 = vmatmul.mubr.msk.f32.gmra.mxu0 %vm660_vm0, %v864_v47  ;;  %1192 = vmatprep.subr.mxu0 %v3419_v48 }
  0x4e   : > { %1193 = vmatpush1.msra.mxu0 %v3418_v49  ;;  %3397 = vmatmul.mubr.msk.f32.gmra.mxu1 %vm660_vm0, %v1002_v51 }
  0x4f   : > { %1194 = vmatprep.subr.mxu0 %v3417_v52  ;;  %980 = vmatprep.mubr.f32.mxu0 %v3895_v50 }
  0x50   : > { %1195 = vmatpush1.msra.mxu0 %v3416_v53  ;;  %1118 = vmatprep.mubr.f32.mxu1 %v3895_v50 }
  0x51   : > { %3370 = vmatmul.mubr.msk.f32.gmra.mxu0 %vm660_vm0, %v865_v54  ;;  %1196 = vmatprep.subr.mxu0 %v3415_v55 }
  0x52   : > { %1197 = vmatpush1.msra.mxu0 %v3414_v56  ;;  %3398 = vmatmul.mubr.msk.f32.gmra.mxu1 %vm660_vm0, %v1003_v57 }
  0x53   : > { %1198 = vmatprep.subr.mxu0 %v3413_v58  ;;  %986 = vmatprep.mubr.f32.mxu0 %v3895_v50 }
  0x54   : > { %1199 = vmatpush1.msra.mxu0 %v3412_v59  ;;  %1124 = vmatprep.mubr.f32.mxu1 %v3895_v50 }
  0x55   : > { %3371 = vmatmul.mubr.msk.f32.gmra.mxu0 %vm660_vm0, %v866_v60  ;;  %1200 = vmatprep.subr.mxu0 %v3411_v61  ;;  %v1279_v60 = vlaneseq }
  0x56   : > { %1201 = vmatpush1.msra.mxu0 %v3410_v62  ;;  %3399 = vmatmul.mubr.msk.f32.gmra.mxu1 %vm660_vm0, %v1004_v63 }
  0x57   : > { %1202 = vmatprep.subr.mxu0 %v3409_v0  ;;  %1244 = vmatprep.mubr.f32.mxu0 %v3895_v50 }
  0x58   : > { %1203 = vmatpush1.msra.mxu0 %v3408_v1  ;;  %1385 = vmatprep.mubr.f32.mxu1 %v3895_v50 }
  0x59   : > { %1204 = vmatprep.subr.mxu0 %v3407_v2 }
  0x5a   : > { %1205 = vmatpush1.msra.mxu0 %v3406_v3  ;;  %v4504_v3 = vshrl.u32 %v1279_v60, 7 }
  0x5b   : > { %1206 = vmatprep.subr.mxu0 %v3405_v4 }
  0x5c   : > { %1207 = vmatpush1.msra.mxu0 %v3404_v5 }
  0x5d   : > { %1208 = vmatprep.subr.mxu0 %v3403_v6 }
  0x5e   : > { %1209 = vmatpush1.msra.mxu0 %v3402_v7 }
  0x5f   : > { %1210 = vmatprep.subr.mxu0 %v3401_v8 }
  0x60   : > { %1211 = vmatpush1.msra.mxu0 %v3400_v9 }
  0x61   : > { %3424 = vmatmul.mubr.msk.f32.vlgmr.msra.gmra.mxu0 %vm660_vm0, %v1139_v10  ;;  %1515 = vmatprep.subr.mxu0 %v3895_v50 }
  0x62   : > { %1250 = vmatprep.mubr.f32.mxu0 %v3895_v50  ;;  %1516 = vmatpush1.msra.mxu0 %v1502_v14 }
  0x63   : > { %1517 = vmatprep.subr.mxu0 %v3895_v50 }
  0x64   : > { %1518 = vmatpush1.msra.mxu0 %v1501_v15 }
  0x65   : > { %3425 = vmatmul.mubr.msk.f32.gmra.mxu0 %vm660_vm0, %v1140_v11  ;;  %1519 = vmatprep.subr.mxu0 %v3895_v50 }
  0x66   : > { %1256 = vmatprep.mubr.f32.mxu0 %v3895_v50  ;;  %1520 = vmatpush1.msra.mxu0 %v1500_v16 }
  0x67   : > { %1521 = vmatprep.subr.mxu0 %v3895_v50 }
  0x68   : > { %1522 = vmatpush1.msra.mxu0 %v1499_v17 }
  0x69   : > { %3426 = vmatmul.mubr.msk.f32.gmra.mxu0 %vm660_vm0, %v1141_v12  ;;  %1523 = vmatprep.subr.mxu0 %v3895_v50 }
  0x6a   : > { %1262 = vmatprep.mubr.f32.mxu0 %v3895_v50  ;;  %1524 = vmatpush1.msra.mxu0 %v1498_v18  ;;  %v4507_v18 = vsub.s32 0, %v4504_v3 }
  0x6b   : > { %1525 = vmatprep.subr.mxu0 %v3895_v50 }
  0x6c   : > { %1526 = vmatpush1.msra.mxu0 %v1497_v19 }
  0x6d   : > { %3427 = vmatmul.mubr.msk.f32.gmra.mxu0 %vm660_vm0, %v1142_v13  ;;  %1527 = vmatprep.subr.mxu0 %v3895_v50 }
  0x6e   : > { %1528 = vmatpush1.msra.mxu0 %v1496_v20 }
  0x6f   : > { %1529 = vmatprep.subr.mxu0 %v3895_v50 }
  0x70   : > { %1530 = vmatpush1.msra.mxu0 %v1495_v21 }
  0x71   : > { %1531 = vmatprep.subr.mxu0 %v3895_v50 }
  0x72   : > { %1532 = vmatpush1.msra.mxu0 %v1494_v22 }
  0x73   : > { %1533 = vmatprep.subr.mxu0 %v3895_v50 }
  0x74   : > { %1534 = vmatpush1.msra.mxu0 %v1493_v23  ;;  %v1277_v23 = vld [vmem:[%s5585_s22] sm:$0x3] }
  0x75   : > { %1535 = vmatprep.subr.mxu0 %v3895_v50 }
  0x76   : > { %1536 = vmatpush1.msra.mxu0 %v1492_v24  ;;  %v1285_v24 = vsub.s32 1, %v4504_v3  ;;  %v2293_v3 = vld [vmem:[%s5563_s9] sm:$0x1f] }
  0x77   : > { %1537 = vmatprep.subr.mxu0 %v3895_v50 }
  0x78   : > { %1538 = vmatpush1.msra.mxu0 %v1491_v25 }
  0x79   : > { %1539 = vmatprep.subr.mxu0 %v3895_v50 }
  0x7a   : > { %1540 = vmatpush1.msra.mxu0 %v1490_v26 }
  0x7b   : > { %1541 = vmatprep.subr.mxu0 %v3895_v50 }
  0x7c   : > { %1542 = vmatpush1.msra.mxu0 %v1489_v27 }
  0x7d   : > { %1543 = vmatprep.subr.mxu0 %v3895_v50 }
  0xe9   : > { %v739_v28 = vpop.f32.mrf.mxu0  ;;  %v840_v29 = vpop.f32.mrf.mxu1 }
  0xea   : > { %v841_v15 = vadd.f32 %v840_v29, %v739_v28 }
  0xeb   : > { %v741_v30 = vpop.f32.mrf.mxu0  ;;  %v842_v32 = vpop.f32.mrf.mxu1 }
  0xec   : > { %v843_v12 = vadd.f32 %v842_v32, %v741_v30 }
  0xf5   : > { %v745_v31 = vpop.f32.mrf.mxu0  ;;  %v846_v34 = vpop.f32.mrf.mxu1 }
  0xf6   : > { %v847_v9 = vadd.f32 %v846_v34, %v745_v31 }
  0xf7   : > { %v747_v33 = vpop.f32.mrf.mxu0  ;;  %v848_v36 = vpop.f32.mrf.mxu1 }
  0xf8   : > { %v849_v5 = vadd.f32 %v848_v36, %v747_v33  ;;  %v1282_v33 = vrot.slane %v1277_v23, %v4507_v18 }
  0xfb   : > { %v751_v35 = vpop.f32.mrf.mxu0  ;;  %v852_v38 = vpop.f32.mrf.mxu1 }
  0xfc   : > { %v853_v1 = vadd.f32 %v852_v38, %v751_v35 }
  0xfd   : > { %v753_v37 = vpop.f32.mrf.mxu0  ;;  %v854_v41 = vpop.f32.mrf.mxu1 }
  0xfe   : > { %v855_v63 = vadd.f32 %v854_v41, %v753_v37  ;;  %v1286_v37 = vrot.slane %v1277_v23, %v1285_v24  ;;  %v1506_v23 = vld [vmem:[%s5559_s5 + $0x98] sm:$0xff] }
 0x101   : > { %v757_v39 = vpop.f32.mrf.mxu0  ;;  %v858_v43 = vpop.f32.mrf.mxu1 }
 0x102   : > { %v859_v0 = vadd.f32 %v858_v43, %v757_v39 }
 0x103   : > { %v759_v40 = vpop.f32.mrf.mxu0  ;;  %v860_v45 = vpop.f32.mrf.mxu1 }
 0x104   : > { %v861_v6 = vadd.f32 %v860_v45, %v759_v40 }
 0x107   : > { %v970_v42 = vpop.f32.mrf.mxu0 }
 0x108   : > { %v993_v25 = vadd.f32 %v970_v42, %v841_v15  ;;  %v1592_v15 = vld [vmem:[%s5560_s6 + $0x10] sm:$0xff] }
 0x109   : > { %v972_v44 = vpop.f32.mrf.mxu0 }
 0x10a   : > { %v1108_v47 = vpop.f32.mrf.mxu1  ;;  %v994_v20 = vadd.f32 %v972_v44, %v843_v12  ;;  %v1595_v12 = vld [vmem:[%s5560_s6 + $0x28] sm:$0xff] }
 0x10b   : > { %v1131_v40 = vadd.f32 %v1108_v47, %v993_v25  ;;  %v1609_v25 = vld [vmem:[%s5560_s6 + $0x98] sm:$0xff] }
 0x10c   : > { %v1110_v49 = vpop.f32.mrf.mxu1 }
 0x10d   : > { %v976_v46 = vpop.f32.mrf.mxu0  ;;  %v1132_v36 = vadd.f32 %v1110_v49, %v994_v20  ;;  %v1590_v20 = vld [vmem:[%s5560_s6] sm:$0xff] }
 0x10e   : > { %v1114_v52 = vpop.f32.mrf.mxu1  ;;  %v995_v16 = vadd.f32 %v976_v46, %v847_v9  ;;  %v1598_v9 = vld [vmem:[%s5560_s6 + $0x40] sm:$0xff] }
 0x10f   : > { %v978_v48 = vpop.f32.mrf.mxu0 }
 0x110   : > { %v1116_v54 = vpop.f32.mrf.mxu1  ;;  %v996_v13 = vadd.f32 %v978_v48, %v849_v5  ;;  %v1133_v32 = vadd.f32 %v1114_v52, %v995_v16  ;;  %v1602_v5 = vld [vmem:[%s5560_s6 + $0x60] sm:$0xff]  ;;  %v1488_v16 = vld [vmem:[%s5559_s5 + $0x8] sm:$0xff] }
 0x111   : > { %v982_v51 = vpop.f32.mrf.mxu0  ;;  %1544 = vmatpush1.msra.mxu0 %v1488_v16  ;;  %v3446_v16 = vld [vmem:[%s5561_s7 + $0xe0] sm:$0xff] }
 0x112   : > { %v1120_v56 = vpop.f32.mrf.mxu1  ;;  %v997_v10 = vadd.f32 %v982_v51, %v853_v1  ;;  %v1134_v30 = vadd.f32 %v1116_v54, %v996_v13  ;;  %v1604_v1 = vld [vmem:[%s5560_s6 + $0x70] sm:$0xff]  ;;  %v1594_v13 = vld [vmem:[%s5560_s6 + $0x20] sm:$0xff]  ;;  %1545 = vmatprep.subr.mxu0 %v3895_v50 }
 0x113   : > { %v984_v53 = vpop.f32.mrf.mxu0 }
 0x114   : > { %v1122_v59 = vpop.f32.mrf.mxu1  ;;  %v998_v7 = vadd.f32 %v984_v53, %v855_v63  ;;  %v1135_v26 = vadd.f32 %v1120_v56, %v997_v10  ;;  %v1398_v63 = vld [vmem:[%s5558_s4] sm:$0xff]  ;;  %v1597_v10 = vld [vmem:[%s5560_s6 + $0x38] sm:$0xff] }
 0x115   : > { %v988_v55 = vpop.f32.mrf.mxu0 }
 0x116   : > { %v1126_v2 = vpop.f32.mrf.mxu1  ;;  %v999_v8 = vadd.f32 %v988_v55, %v859_v0  ;;  %v1136_v21 = vadd.f32 %v1122_v59, %v998_v7  ;;  %v1605_v0 = vld [vmem:[%s5560_s6 + $0x78] sm:$0xff]  ;;  %v1600_v7 = vld [vmem:[%s5560_s6 + $0x50] sm:$0xff] }
 0x117   : > { %v990_v57 = vpop.f32.mrf.mxu0 }
 0x118   : > { %v1000_v14 = vadd.f32 %v990_v57, %v861_v6  ;;  %v1128_v17 = vpop.f32.mrf.mxu1  ;;  %v1137_v22 = vadd.f32 %v1126_v2, %v999_v8  ;;  %v1399_v2 = vld [vmem:[%s5558_s4 + $0x8] sm:$0x3f]  ;;  %v1601_v6 = vld [vmem:[%s5560_s6 + $0x58] sm:$0xff] }
 0x119   : > { %v1599_v8 = vld [vmem:[%s5560_s6 + $0x48] sm:$0xff] }
 0x11a   : > { %v1138_v28 = vadd.f32 %v1128_v17, %v1000_v14  ;;  %v1593_v14 = vld [vmem:[%s5560_s6 + $0x18] sm:$0xff]  ;;  %v1591_v17 = vld [vmem:[%s5560_s6 + $0x8] sm:$0xff] }
 0x121   : > { %v1246_v58 = vpop.f32.mrf.mxu0 }
 0x122   : > { %v1269_v46 = vadd.f32 %v1246_v58, %v1131_v40 }
 0x123   : > { %v1248_v61 = vpop.f32.mrf.mxu0 }
 0x124   : > { %v1270_v43 = vadd.f32 %v1248_v61, %v1132_v36  ;;  %v1289_v56 = vadd.f32 %v1282_v33, %v1269_v46  ;;  %v1305_v61 = vld [vmem:[%s5586_s25] sm:$0xff]  ;;  %v3459_v46 = vld [vmem:[%s5561_s7 + $0x148] sm:$0xff] }
 0x125   : > { %v1252_v62 = vpop.f32.mrf.mxu0 }
 0x126   : > { %v1271_v41 = vadd.f32 %v1252_v62, %v1133_v32  ;;  %v1290_v55 = vadd.f32 %v1286_v37, %v1270_v43  ;;  %v1297_v58 = vmax.f32 %v1289_v56, 0.0  ;;  %v1306_v62 = vld [vmem:[%s5586_s25 + $0x8] sm:$0x3f]  ;;  %v1714_v43 = vld [vmem:[%s5561_s7 + $0xa0] sm:$0xf] }
 0x127   : > { %v1254_v4 = vpop.f32.mrf.mxu0  ;;  %v1715_v32 = vld [vmem:[%s5561_s7 + $0xa8] sm:$0xf]  ;;  %v1710_v56 = vld [vmem:[%s5561_s7 + $0x80] sm:$0xff] }
 0x128   : > { %v1272_v38 = vadd.f32 %v1254_v4, %v1134_v30  ;;  %v1291_v53 = vadd.f32 %v1282_v33, %v1271_v41  ;;  %v1298_v60 = vmax.f32 %v1290_v55, 0.0  ;;  %v1603_v4 = vld [vmem:[%s5560_s6 + $0x68] sm:$0xff] }
 0x129   : > { %v1258_v11 = vpop.f32.mrf.mxu0  ;;  %v1504_v30 = vld [vmem:[%s5559_s5 + $0x88] sm:$0xff] }
 0x12a   : > { %v1273_v34 = vadd.f32 %v1258_v11, %v1135_v26  ;;  %v1292_v51 = vadd.f32 %v1286_v37, %v1272_v38  ;;  %v1299_v59 = vmax.f32 %v1291_v53, 0.0  ;;  %v1596_v11 = vld [vmem:[%s5560_s6 + $0x30] sm:$0xff]  ;;  %v1711_v55 = vld [vmem:[%s5561_s7 + $0x88] sm:$0xff] }
 0x12b   : > { %v1260_v19 = vpop.f32.mrf.mxu0  ;;  %v1505_v26 = vld [vmem:[%s5559_s5 + $0x90] sm:$0xff] }
 0x12c   : > { %v1274_v29 = vadd.f32 %v1260_v19, %v1136_v21  ;;  %v1293_v48 = vadd.f32 %v1282_v33, %v1273_v34  ;;  %v1300_v47 = vmax.f32 %v1292_v51, 0.0  ;;  %v1487_v19 = vld [vmem:[%s5559_s5] sm:$0xff]  ;;  %v1712_v53 = vld [vmem:[%s5561_s7 + $0x90] sm:$0xff] }
 0x12d   : > { %v1264_v27 = vpop.f32.mrf.mxu0  ;;  %1546 = vmatpush1.msra.mxu0 %v1487_v19  ;;  %v1507_v21 = vld [vmem:[%s5559_s5 + $0xa0] sm:$0xff]  ;;  %v3445_v19 = vld [vmem:[%s5561_s7 + $0xd8] sm:$0xff] }
 0x12e   : > { %v1275_v31 = vadd.f32 %v1264_v27, %v1137_v22  ;;  %v1294_v44 = vadd.f32 %v1286_v37, %v1274_v29  ;;  %v1301_v57 = vmax.f32 %v1293_v48, 0.0  ;;  %1569 = vmatprep.subr.mxu0 %v3895_v50  ;;  %v1610_v22 = vld [vmem:[%s5560_s6 + $0xa0] sm:$0xff]  ;;  %v1608_v27 = vld [vmem:[%s5560_s6 + $0x90] sm:$0xff] }
 0x12f   : > { %v1266_v35 = vpop.f32.mrf.mxu0  ;;  %1570 = vmatpush2.msra.mxu0 %v1507_v21  ;;  %v1503_v29 = vld [vmem:[%s5559_s5 + $0x80] sm:$0xff]  ;;  %v3444_v21 = vld [vmem:[%s5561_s7 + $0xd0] sm:$0xff] }
 0x130   : > { %v1276_v39 = vadd.f32 %v1266_v35, %v1138_v28  ;;  %v1295_v42 = vadd.f32 %v1282_v33, %v1275_v31  ;;  %v1302_v49 = vmax.f32 %v1294_v44, 0.0  ;;  %1571 = vmatprep.subr.mxu0 %v3895_v50  ;;  %v1607_v28 = vld [vmem:[%s5560_s6 + $0x88] sm:$0xff]  ;;  %v1606_v31 = vld [vmem:[%s5560_s6 + $0x80] sm:$0xff]  ;;  %v3461_v33 = vld [vmem:[%s5561_s7 + $0x158] sm:$0xf] }
 0x131   : > { %1572 = vmatpush2.msra.mxu0 %v1506_v23  ;;  %v3460_v44 = vld [vmem:[%s5561_s7 + $0x150] sm:$0xf]  ;;  %v3443_v23 = vld [vmem:[%s5561_s7 + $0xc8] sm:$0xff] }
 0x132   : > { %v1296_v45 = vadd.f32 %v1286_v37, %v1276_v39  ;;  %v1303_v54 = vmax.f32 %v1295_v42, 0.0  ;;  %1573 = vmatprep.subr.mxu0 %v3895_v50 }
 0x133   : > { %1574 = vmatpush2.msra.mxu0 %v1505_v26  ;;  %v3442_v26 = vld [vmem:[%s5561_s7 + $0xc0] sm:$0xff] }
 0x134   : > { %v1304_v52 = vmax.f32 %v1296_v45, 0.0  ;;  %1575 = vmatprep.subr.mxu0 %v3895_v50  ;;  %v1713_v45 = vld [vmem:[%s5561_s7 + $0x98] sm:$0xff] }
 0x135   : > { %1576 = vmatpush2.msra.mxu0 %v1504_v30  ;;  %v3440_v30 = vld [vmem:[%s5561_s7 + $0xb0] sm:$0xff] }
 0x136   : > { %3428 = vmatprep.subr.msk.mxu1 %vm1314_vm1, %v1304_v52  ;;  %1577 = vmatprep.subr.mxu0 %v3895_v50 }
 0x137   : > { %3429 = vmatpush1.msk.msra.mxu1 %vm1314_vm1, %v1303_v54  ;;  %1578 = vmatpush2.msra.mxu0 %v1503_v29 }
 0x138   : > { %1347 = vmatprep.subr.mxu1 %v1302_v49  ;;  %3462 = vmatprep.subr.msk.mxu0 %vm1314_vm1, %v3461_v33 }
 0x139   : > { %1348 = vmatpush1.msra.mxu1 %v1301_v57 }
 0x13a   : > { %1349 = vmatprep.subr.mxu1 %v1300_v47 }
 0x13b   : > { %1350 = vmatpush1.msra.mxu1 %v1299_v59 }
 0x13c   : > { %1351 = vmatprep.subr.mxu1 %v1298_v60 }
 0x13d   : > { %1352 = vmatpush1.msra.mxu1 %v1297_v58 }
 0x13e   : > { %3430 = vmatmul.mubr.msk.f32.vlgmr.msra.gmra.mxu1 %vm1307_vm2, %v1305_v61  ;;  %3432 = vmatprep.subr.msk.mxu1 %vm1314_vm1, %v1304_v52  ;;  %v1707_v61 = vld [vmem:[%s5561_s7 + $0x68] sm:$0xff] }
 0x13f   : > { %3433 = vmatpush1.msk.msra.mxu1 %vm1314_vm1, %v1303_v54  ;;  %1391 = vmatprep.mubr.f32.mxu1 %v3895_v50  ;;  %v3458_v54 = vld [vmem:[%s5561_s7 + $0x140] sm:$0xff] }
 0x140   : > { %1432 = vmatprep.subr.mxu1 %v1302_v49  ;;  %v3457_v49 = vld [vmem:[%s5561_s7 + $0x138] sm:$0xff] }
 0x141   : > { %1433 = vmatpush1.msra.mxu1 %v1301_v57  ;;  %v3456_v57 = vld [vmem:[%s5561_s7 + $0x130] sm:$0xff] }
 0x142   : > { %3431 = vmatmul.mubr.msk.f32.gmra.mxu1 %vm1307_vm2, %v1306_v62  ;;  %1434 = vmatprep.subr.mxu1 %v1300_v47  ;;  %v1709_v47 = vld [vmem:[%s5561_s7 + $0x78] sm:$0xff]  ;;  %v1706_v62 = vld [vmem:[%s5561_s7 + $0x60] sm:$0xff] }
 0x143   : > { %1435 = vmatpush1.msra.mxu1 %v1299_v59  ;;  %1470 = vmatprep.mubr.f32.mxu1 %v3895_v50  ;;  %v3455_v59 = vld [vmem:[%s5561_s7 + $0x128] sm:$0xff] }
 0x144   : > { %1436 = vmatprep.subr.mxu1 %v1298_v60  ;;  %v1708_v60 = vld [vmem:[%s5561_s7 + $0x70] sm:$0xff] }
 0x145   : > { %1437 = vmatpush1.msra.mxu1 %v1297_v58  ;;  %v3454_v58 = vld [vmem:[%s5561_s7 + $0x120] sm:$0xff] }
 0x146   : > { %3434 = vmatmul.mubr.msk.f32.vlgmr.msra.gmra.mxu1 %vm1307_vm2, %v1398_v63  ;;  %1611 = vmatprep.subr.mxu1 %v3895_v50  ;;  %v1705_v63 = vld [vmem:[%s5561_s7 + $0x58] sm:$0xff] }
 0x147   : > { %1476 = vmatprep.mubr.f32.mxu1 %v3895_v50  ;;  %1612 = vmatpush1.msra.mxu1 %v1605_v0  ;;  %v1704_v0 = vld [vmem:[%s5561_s7 + $0x50] sm:$0xff] }
 0x148   : > { %1613 = vmatprep.subr.mxu1 %v3895_v50 }
 0x149   : > { %1614 = vmatpush1.msra.mxu1 %v1604_v1  ;;  %v3453_v1 = vld [vmem:[%s5561_s7 + $0x118] sm:$0xff] }
 0x14a   : > { %3435 = vmatmul.mubr.msk.f32.gmra.mxu1 %vm1307_vm2, %v1399_v2  ;;  %1615 = vmatprep.subr.mxu1 %v3895_v50  ;;  %v1703_v2 = vld [vmem:[%s5561_s7 + $0x48] sm:$0xff] }
 0x14b   : > { %1616 = vmatpush1.msra.mxu1 %v1603_v4  ;;  %v3452_v4 = vld [vmem:[%s5561_s7 + $0x110] sm:$0xff] }
 0x14c   : > { %1617 = vmatprep.subr.mxu1 %v3895_v50 }
 0x14d   : > { %1618 = vmatpush1.msra.mxu1 %v1602_v5  ;;  %v1702_v5 = vld [vmem:[%s5561_s7 + $0x40] sm:$0xff] }
 0x14e   : > { %1619 = vmatprep.subr.mxu1 %v3895_v50 }
 0x14f   : > { %1620 = vmatpush1.msra.mxu1 %v1601_v6  ;;  %v3451_v6 = vld [vmem:[%s5561_s7 + $0x108] sm:$0xff] }
 0x150   : > { %1621 = vmatprep.subr.mxu1 %v3895_v50 }
 0x151   : > { %1622 = vmatpush1.msra.mxu1 %v1600_v7  ;;  %v1701_v7 = vld [vmem:[%s5561_s7 + $0x38] sm:$0xff] }
 0x152   : > { %1623 = vmatprep.subr.mxu1 %v3895_v50 }
 0x153   : > { %1624 = vmatpush1.msra.mxu1 %v1599_v8  ;;  %v3450_v8 = vld [vmem:[%s5561_s7 + $0x100] sm:$0xff] }
 0x154   : > { %1625 = vmatprep.subr.mxu1 %v3895_v50 }
 0x155   : > { %1626 = vmatpush1.msra.mxu1 %v1598_v9  ;;  %v1700_v9 = vld [vmem:[%s5561_s7 + $0x30] sm:$0xff] }
 0x156   : > { %1627 = vmatprep.subr.mxu1 %v3895_v50 }
 0x157   : > { %1628 = vmatpush1.msra.mxu1 %v1597_v10  ;;  %v3449_v10 = vld [vmem:[%s5561_s7 + $0xf8] sm:$0xff] }
 0x158   : > { %1629 = vmatprep.subr.mxu1 %v3895_v50 }
 0x159   : > { %1630 = vmatpush1.msra.mxu1 %v1596_v11  ;;  %v1699_v11 = vld [vmem:[%s5561_s7 + $0x28] sm:$0xff] }
 0x15a   : > { %1631 = vmatprep.subr.mxu1 %v3895_v50 }
 0x15b   : > { %1632 = vmatpush1.msra.mxu1 %v1595_v12  ;;  %v3448_v12 = vld [vmem:[%s5561_s7 + $0xf0] sm:$0xff] }
 0x15c   : > { %1633 = vmatprep.subr.mxu1 %v3895_v50 }
 0x15d   : > { %1634 = vmatpush1.msra.mxu1 %v1594_v13  ;;  %v1698_v13 = vld [vmem:[%s5561_s7 + $0x20] sm:$0xff] }
 0x15e   : > { %1635 = vmatprep.subr.mxu1 %v3895_v50 }
 0x15f   : > { %1636 = vmatpush1.msra.mxu1 %v1593_v14  ;;  %v3447_v14 = vld [vmem:[%s5561_s7 + $0xe8] sm:$0xff] }
 0x160   : > { %1637 = vmatprep.subr.mxu1 %v3895_v50 }
 0x161   : > { %1638 = vmatpush1.msra.mxu1 %v1592_v15  ;;  %v1697_v15 = vld [vmem:[%s5561_s7 + $0x18] sm:$0xff] }
 0x162   : > { %1639 = vmatprep.subr.mxu1 %v3895_v50 }
 0x163   : > { %1640 = vmatpush1.msra.mxu1 %v1591_v17  ;;  %v1696_v17 = vld [vmem:[%s5561_s7 + $0x10] sm:$0xff] }
 0x164   : > { %1641 = vmatprep.subr.mxu1 %v3895_v50 }
 0x165   : > { %1642 = vmatpush1.msra.mxu1 %v1590_v20  ;;  %v1695_v20 = vld [vmem:[%s5561_s7 + $0x8] sm:$0xff] }
 0x166   : > { %1665 = vmatprep.subr.mxu1 %v3895_v50 }
 0x167   : > { %1666 = vmatpush2.msra.mxu1 %v1610_v22  ;;  %v1694_v22 = vld [vmem:[%s5561_s7] sm:$0xff] }
 0x168   : > { %1667 = vmatprep.subr.mxu1 %v3895_v50 }
 0x169   : > { %1668 = vmatpush2.msra.mxu1 %v1609_v25  ;;  %v3517_v25 = vld [vmem:[%s5561_s7 + $0x2b8] sm:$0xf] }
 0x16a   : > { %1669 = vmatprep.subr.mxu1 %v3895_v50 }
 0x16b   : > { %1670 = vmatpush2.msra.mxu1 %v1608_v27  ;;  %v3441_v27 = vld [vmem:[%s5561_s7 + $0xb8] sm:$0xff] }
 0x16c   : > { %1671 = vmatprep.subr.mxu1 %v3895_v50 }
 0x16d   : > { %1672 = vmatpush2.msra.mxu1 %v1607_v28  ;;  %v3491_v28 = vld [vmem:[%s5561_s7 + $0x208] sm:$0xf] }
 0x16e   : > { %1673 = vmatprep.subr.mxu1 %v3895_v50 }
 0x16f   : > { %1674 = vmatpush2.msra.mxu1 %v1606_v31 }
 0x170   : > { %3466 = vmatprep.subr.msk.mxu1 %vm1314_vm1, %v1715_v32 }
 0x1fe   : > { %v1387_v34 = vpop.f32.mrf.mxu1 }
 0x200   : > { %v1389_v35 = vpop.f32.mrf.mxu1 }
 0x202   : > { %v1393_v36 = vpop.f32.mrf.mxu1 }
 0x204   : > { %v1395_v37 = vpop.f32.mrf.mxu1 }
 0x206   : > { %v1472_v38 = vpop.f32.mrf.mxu1 }
 0x207   : > { %v1483_v41 = vmax.f32 %v1387_v34, %v1472_v38 }
 0x208   : > { %v1474_v39 = vpop.f32.mrf.mxu1 }
 0x209   : > { %v1484_v40 = vmax.f32 %v1389_v35, %v1474_v39 }
 0x20a   : > { %v1478_v42 = vpop.f32.mrf.mxu1 }
 0x20b   : > { %3436 = vmatprep.mubr.msk.f32.mxu0 %vm1508_vm3, %v1484_v40  ;;  %3438 = vmatprep.mubr.msk.f32.mxu1 %vm1508_vm3, %v1484_v40  ;;  %v1485_v52 = vmax.f32 %v1393_v36, %v1478_v42  ;;  %v3516_v40 = vld [vmem:[%s5561_s7 + $0x2b0] sm:$0xf]  ;;  %v3515_v42 = vld [vmem:[%s5561_s7 + $0x2a8] sm:$0xff] }
 0x20c   : > { %v1480_v48 = vpop.f32.mrf.mxu1  ;;  %1580 = vmatmul.mubr.f32.vlgmr.msra.gmra.mxu0 %v1483_v41  ;;  %1676 = vmatmul.mubr.f32.vlgmr.msra.gmra.mxu1 %v1483_v41 }
 0x20d   : > { %v1486_v51 = vmax.f32 %v1395_v37, %v1480_v48  ;;  %3467 = vmatpush1.msk.msra.mxu1 %vm1314_vm1, %v1714_v43  ;;  %3463 = vmatpush1.msk.msra.mxu0 %vm1314_vm1, %v3460_v44  ;;  %v3514_v43 = vld [vmem:[%s5561_s7 + $0x2a0] sm:$0xff]  ;;  %v3513_v44 = vld [vmem:[%s5561_s7 + $0x298] sm:$0xff] }
 0x20e   : > { %1854 = vmatprep.subr.mxu1 %v1713_v45  ;;  %1765 = vmatprep.subr.mxu0 %v3459_v46  ;;  %v3490_v45 = vld [vmem:[%s5561_s7 + $0x200] sm:$0xf]  ;;  %v3512_v46 = vld [vmem:[%s5561_s7 + $0x290] sm:$0xff] }
 0x20f   : > { %3437 = vmatprep.mubr.msk.f32.mxu0 %vm1508_vm3, %v1486_v51  ;;  %3439 = vmatprep.mubr.msk.f32.mxu1 %vm1508_vm3, %v1486_v51 }
 0x210   : > { %1585 = vmatmul.mubr.f32.gmra.mxu0 %v1485_v52  ;;  %1681 = vmatmul.mubr.f32.gmra.mxu1 %v1485_v52  ;;  %v3489_v52 = vld [vmem:[%s5561_s7 + $0x1f8] sm:$0xff] }
 0x211   : > { %1855 = vmatpush1.msra.mxu1 %v1712_v53  ;;  %1766 = vmatpush1.msra.mxu0 %v3458_v54  ;;  %v3511_v53 = vld [vmem:[%s5561_s7 + $0x288] sm:$0xff]  ;;  %v3488_v54 = vld [vmem:[%s5561_s7 + $0x1f0] sm:$0xff] }
 0x212   : > { %1856 = vmatprep.subr.mxu1 %v1711_v55  ;;  %1767 = vmatprep.subr.mxu0 %v3457_v49  ;;  %v3510_v55 = vld [vmem:[%s5561_s7 + $0x280] sm:$0xff]  ;;  %v3487_v49 = vld [vmem:[%s5561_s7 + $0x1e8] sm:$0xff] }
 0x213   : > { %1857 = vmatpush1.msra.mxu1 %v1710_v56  ;;  %1768 = vmatpush1.msra.mxu0 %v3456_v57  ;;  %v3509_v56 = vld [vmem:[%s5561_s7 + $0x278] sm:$0xff]  ;;  %v3508_v57 = vld [vmem:[%s5561_s7 + $0x270] sm:$0xff] }
 0x214   : > { %1858 = vmatprep.subr.mxu1 %v1709_v47  ;;  %1769 = vmatprep.subr.mxu0 %v3455_v59  ;;  %v3486_v47 = vld [vmem:[%s5561_s7 + $0x1e0] sm:$0xff]  ;;  %v3507_v59 = vld [vmem:[%s5561_s7 + $0x268] sm:$0xff] }
 0x215   : > { %1859 = vmatpush1.msra.mxu1 %v1708_v60  ;;  %1770 = vmatpush1.msra.mxu0 %v3454_v58  ;;  %v3485_v58 = vld [vmem:[%s5561_s7 + $0x1d8] sm:$0xff] }
 0x216   : > { %1860 = vmatprep.subr.mxu1 %v1707_v61  ;;  %1906 = vmatprep.mubr.f32.mxu1 %v3895_v50  ;;  %v3506_v61 = vld [vmem:[%s5561_s7 + $0x260] sm:$0xff] }
 0x217   : > { %1861 = vmatpush1.msra.mxu1 %v1706_v62  ;;  %1817 = vmatprep.mubr.f32.mxu0 %v3895_v50  ;;  %v3484_v62 = vld [vmem:[%s5561_s7 + $0x1d0] sm:$0xff] }
 0x218   : > { %1862 = vmatprep.subr.mxu1 %v1705_v63  ;;  %1771 = vmatprep.subr.mxu0 %v3453_v1  ;;  %v3505_v63 = vld [vmem:[%s5561_s7 + $0x258] sm:$0xff]  ;;  %v3504_v1 = vld [vmem:[%s5561_s7 + $0x250] sm:$0xff] }
 0x219   : > { %1863 = vmatpush1.msra.mxu1 %v1704_v0  ;;  %1772 = vmatpush1.msra.mxu0 %v3452_v4  ;;  %v3483_v0 = vld [vmem:[%s5561_s7 + $0x1c8] sm:$0xff] }
 0x21a   : > { %1864 = vmatprep.subr.mxu1 %v1703_v2  ;;  %1773 = vmatprep.subr.mxu0 %v3451_v6  ;;  %v3482_v2 = vld [vmem:[%s5561_s7 + $0x1c0] sm:$0xff]  ;;  %v3503_v4 = vld [vmem:[%s5561_s7 + $0x248] sm:$0xff] }
 0x21b   : > { %1865 = vmatpush1.msra.mxu1 %v1702_v5  ;;  %1774 = vmatpush1.msra.mxu0 %v3450_v8  ;;  %v3481_v5 = vld [vmem:[%s5561_s7 + $0x1b8] sm:$0xff]  ;;  %v3502_v6 = vld [vmem:[%s5561_s7 + $0x240] sm:$0xff] }
 0x21c   : > { %1866 = vmatprep.subr.mxu1 %v1701_v7  ;;  %1775 = vmatprep.subr.mxu0 %v3449_v10  ;;  %v3480_v7 = vld [vmem:[%s5561_s7 + $0x1b0] sm:$0xff]  ;;  %v3501_v8 = vld [vmem:[%s5561_s7 + $0x238] sm:$0xff] }
 0x21d   : > { %1867 = vmatpush1.msra.mxu1 %v1700_v9  ;;  %1776 = vmatpush1.msra.mxu0 %v3448_v12  ;;  %v3479_v9 = vld [vmem:[%s5561_s7 + $0x1a8] sm:$0xff]  ;;  %v3500_v10 = vld [vmem:[%s5561_s7 + $0x230] sm:$0xff] }
 0x21e   : > { %1868 = vmatprep.subr.mxu1 %v1699_v11  ;;  %1777 = vmatprep.subr.mxu0 %v3447_v14  ;;  %v3478_v11 = vld [vmem:[%s5561_s7 + $0x1a0] sm:$0xff]  ;;  %v3499_v12 = vld [vmem:[%s5561_s7 + $0x228] sm:$0xff] }
 0x21f   : > { %1869 = vmatpush1.msra.mxu1 %v1698_v13  ;;  %1778 = vmatpush1.msra.mxu0 %v3446_v16  ;;  %v3477_v13 = vld [vmem:[%s5561_s7 + $0x198] sm:$0xff]  ;;  %v3498_v14 = vld [vmem:[%s5561_s7 + $0x220] sm:$0xff] }
 0x220   : > { %1870 = vmatprep.subr.mxu1 %v1697_v15  ;;  %1779 = vmatprep.subr.mxu0 %v3445_v19  ;;  %v3476_v15 = vld [vmem:[%s5561_s7 + $0x190] sm:$0xff]  ;;  %v3497_v16 = vld [vmem:[%s5561_s7 + $0x218] sm:$0xff] }
 0x221   : > { %1871 = vmatpush1.msra.mxu1 %v1696_v17  ;;  %1780 = vmatpush1.msra.mxu0 %v3444_v21  ;;  %v3475_v17 = vld [vmem:[%s5561_s7 + $0x188] sm:$0xff]  ;;  %v3496_v19 = vld [vmem:[%s5561_s7 + $0x210] sm:$0xff]  ;;  %v3473_v21 = vld [vmem:[%s5561_s7 + $0x178] sm:$0xff] }
 0x222   : > { %1872 = vmatprep.subr.mxu1 %v1695_v20  ;;  %1781 = vmatprep.subr.mxu0 %v3443_v23  ;;  %v3474_v20 = vld [vmem:[%s5561_s7 + $0x180] sm:$0xff] }
 0x223   : > { %1873 = vmatpush1.msra.mxu1 %v1694_v22  ;;  %1782 = vmatpush1.msra.mxu0 %v3442_v26  ;;  %v3472_v22 = vld [vmem:[%s5561_s7 + $0x170] sm:$0xff]  ;;  %v3470_v26 = vld [vmem:[%s5561_s7 + $0x160] sm:$0xff] }
 0x224   : > { %3518 = vmatprep.subr.msk.mxu1 %vm1314_vm1, %v3517_v25  ;;  %1783 = vmatprep.subr.mxu0 %v3441_v27  ;;  %v3471_v25 = vld [vmem:[%s5561_s7 + $0x168] sm:$0xff] }
 0x225   : > { %1784 = vmatpush1.msra.mxu0 %v3440_v30  ;;  %v3543_v27 = vld [vmem:[%s5561_s7 + $0x368] sm:$0xf] }
 0x226   : > { %3492 = vmatprep.subr.msk.mxu0 %vm1314_vm1, %v3491_v28 }
 0x2cc   : > { %v1581_v29 = vpop.f32.mrf.mxu0  ;;  %v1677_v31 = vpop.f32.mrf.mxu1 }
 0x2cd   : > { %v1686_v32 = vmax.f32 %v1581_v29, %v1677_v31  ;;  %v3542_v29 = vld [vmem:[%s5561_s7 + $0x360] sm:$0xf]  ;;  %v3541_v31 = vld [vmem:[%s5561_s7 + $0x358] sm:$0xff] }
 0x2ce   : > { %v1583_v33 = vpop.f32.mrf.mxu0  ;;  %v1679_v34 = vpop.f32.mrf.mxu1 }
 0x2cf   : > { %1689 = vst.msk [vmem:[#allocation2] sm:$0xff] %vm1688_vm4, %v1686_v32  ;;  %v3540_v32 = vld [vmem:[%s5561_s7 + $0x350] sm:$0xff]  ;;  %v3539_v33 = vld [vmem:[%s5561_s7 + $0x348] sm:$0xff]  ;;  %v3538_v34 = vld [vmem:[%s5561_s7 + $0x340] sm:$0xff] }
 0x2d0   : > { %v1586_v35 = vpop.f32.mrf.mxu0  ;;  %v1682_v36 = vpop.f32.mrf.mxu1 }
 0x2d1   : > { %v1687_v37 = vmax.f32 %v1586_v35, %v1682_v36  ;;  %v3537_v36 = vld [vmem:[%s5561_s7 + $0x338] sm:$0xff] }
 0x2d2   : > { %v1588_v38 = vpop.f32.mrf.mxu0  ;;  %v1684_v39 = vpop.f32.mrf.mxu1 }
 0x2d3   : > { %1691 = vst.msk [vmem:[#allocation2 + $0x8] sm:$0x3f] %vm1690_vm5, %v1687_v37  ;;  %v3536_v37 = vld [vmem:[%s5561_s7 + $0x330] sm:$0xff]  ;;  %v3535_v38 = vld [vmem:[%s5561_s7 + $0x328] sm:$0xff]  ;;  %v3534_v39 = vld [vmem:[%s5561_s7 + $0x320] sm:$0xff] }
 0x2d6   : > { %v1692_v41 = vld [vmem:[#allocation2] sm:$0xff] }
 0x2d7   : > { %3468 = vmatmul.mubr.msk.f32.vlgmr.msra.gmra.mxu1 %vm1688_vm4, %v1692_v41  ;;  %v3532_v41 = vld [vmem:[%s5561_s7 + $0x310] sm:$0xff] }
 0x2d8   : > { %3519 = vmatpush1.msk.msra.mxu1 %vm1314_vm1, %v3516_v40  ;;  %1912 = vmatprep.mubr.f32.mxu1 %v3895_v50  ;;  %v3533_v40 = vld [vmem:[%s5561_s7 + $0x318] sm:$0xff] }
 0x2d9   : > { %2086 = vmatprep.subr.mxu1 %v3515_v42  ;;  %v3531_v42 = vld [vmem:[%s5561_s7 + $0x308] sm:$0xff] }
 0x2da   : > { %2087 = vmatpush1.msra.mxu1 %v3514_v43  ;;  %v1716_v48 = vld [vmem:[#allocation2 + $0x1] sm:$0xff]  ;;  %v1717_v60 = vld [vmem:[#allocation2 + $0x9] sm:$0x3]  ;;  %v2038_v28 = vld [vmem:[#allocation2 + $0xb] sm:$0x3] }
 0x2db   : > { %v1693_v51 = vld [vmem:[#allocation2 + $0x8] sm:$0x3]  ;;  %2088 = vmatprep.subr.mxu1 %v3513_v44  ;;  %3464 = vmatmul.mubr.msk.f32.vlgmr.msra.gmra.mxu0 %vm1688_vm4, %v1716_v48  ;;  %v1920_v35 = vld [vmem:[#allocation2 + $0xa] sm:$0x3]  ;;  %v3530_v43 = vld [vmem:[%s5561_s7 + $0x300] sm:$0xff] }
 0x2dc   : > { %3469 = vmatmul.mubr.msk.f32.gmra.mxu1 %vm1688_vm4, %v1693_v51  ;;  %3493 = vmatpush1.msk.msra.mxu0 %vm1314_vm1, %v3490_v45  ;;  %v2037_v23 = vld [vmem:[#allocation2 + $0x3] sm:$0xff]  ;;  %v3529_v44 = vld [vmem:[%s5561_s7 + $0x2f8] sm:$0xff]  ;;  %v3528_v45 = vld [vmem:[%s5561_s7 + $0x2f0] sm:$0xff] }
 0x2dd   : > { %2089 = vmatpush1.msra.mxu1 %v3512_v46  ;;  %1968 = vmatprep.subr.mxu0 %v3489_v52  ;;  %v1919_v30 = vld [vmem:[#allocation2 + $0x2] sm:$0xff]  ;;  %v3525_v51 = vld [vmem:[%s5561_s7 + $0x2d8] sm:$0xff]  ;;  %v3524_v52 = vld [vmem:[%s5561_s7 + $0x2d0] sm:$0xff] }
 0x2de   : > { %2090 = vmatprep.subr.mxu1 %v3511_v53  ;;  %1969 = vmatpush1.msra.mxu0 %v3488_v54  ;;  %v3527_v46 = vld [vmem:[%s5561_s7 + $0x2e8] sm:$0xff]  ;;  %v3526_v48 = vld [vmem:[%s5561_s7 + $0x2e0] sm:$0xff] }
 0x2df   : > { %2091 = vmatpush1.msra.mxu1 %v3510_v55  ;;  %1823 = vmatprep.mubr.f32.mxu0 %v3895_v50  ;;  %v3523_v53 = vld [vmem:[%s5561_s7 + $0x2c8] sm:$0xff]  ;;  %v3522_v54 = vld [vmem:[%s5561_s7 + $0x2c0] sm:$0xff] }
 0x2e0   : > { %1970 = vmatprep.subr.mxu0 %v3487_v49  ;;  %2092 = vmatprep.subr.mxu1 %v3509_v56  ;;  %v2155_v55 = vld [vmem:[#allocation2 + $0x4] sm:$0xff]  ;;  %v2156_v49 = vld [vmem:[#allocation2 + $0xc] sm:$0x3] }
 0x2e1   : > { %3465 = vmatmul.mubr.msk.f32.gmra.mxu0 %vm1688_vm4, %v1717_v60  ;;  %2093 = vmatpush1.msra.mxu1 %v3508_v57 }
 0x2e2   : > { %1971 = vmatpush1.msra.mxu0 %v3486_v47  ;;  %2094 = vmatprep.subr.mxu1 %v3507_v59 }
 0x2e3   : > { %1972 = vmatprep.subr.mxu0 %v3485_v58  ;;  %2095 = vmatpush1.msra.mxu1 %v3506_v61 }
 0x2e4   : > { %1973 = vmatpush1.msra.mxu0 %v3484_v62  ;;  %2096 = vmatprep.subr.mxu1 %v3505_v63 }
 0x2e5   : > { %1974 = vmatprep.subr.mxu0 %v3483_v0  ;;  %2097 = vmatpush1.msra.mxu1 %v3504_v1 }
 0x2e6   : > { %1975 = vmatpush1.msra.mxu0 %v3482_v2  ;;  %2098 = vmatprep.subr.mxu1 %v3503_v4 }
 0x2e7   : > { %1976 = vmatprep.subr.mxu0 %v3481_v5  ;;  %2099 = vmatpush1.msra.mxu1 %v3502_v6 }
 0x2e8   : > { %1977 = vmatpush1.msra.mxu0 %v3480_v7  ;;  %2100 = vmatprep.subr.mxu1 %v3501_v8 }
 0x2e9   : > { %1978 = vmatprep.subr.mxu0 %v3479_v9  ;;  %2101 = vmatpush1.msra.mxu1 %v3500_v10 }
 0x2ea   : > { %1979 = vmatpush1.msra.mxu0 %v3478_v11  ;;  %2102 = vmatprep.subr.mxu1 %v3499_v12 }
 0x2eb   : > { %1980 = vmatprep.subr.mxu0 %v3477_v13  ;;  %2103 = vmatpush1.msra.mxu1 %v3498_v14 }
 0x2ec   : > { %1981 = vmatpush1.msra.mxu0 %v3476_v15  ;;  %2104 = vmatprep.subr.mxu1 %v3497_v16 }
 0x2ed   : > { %1982 = vmatprep.subr.mxu0 %v3475_v17  ;;  %2105 = vmatpush1.msra.mxu1 %v3496_v19  ;;  %v2273_v17 = vld [vmem:[%s5562_s8] sm:$0x3] }
 0x2ee   : > { %1983 = vmatpush1.msra.mxu0 %v3474_v20  ;;  %2138 = vmatprep.mubr.f32.mxu1 %v3895_v50 }
 0x2ef   : > { %1984 = vmatprep.subr.mxu0 %v3473_v21  ;;  %3520 = vmatmul.mubr.msk.f32.vlgmr.msra.gmra.mxu1 %vm1688_vm4, %v2037_v23 }
 0x2f0   : > { %1985 = vmatpush1.msra.mxu0 %v3472_v22  ;;  %2020 = vmatprep.mubr.f32.mxu0 %v3895_v50 }
 0x2f1   : > { %1986 = vmatprep.subr.mxu0 %v3471_v25  ;;  %2144 = vmatprep.mubr.f32.mxu1 %v3895_v50 }
 0x2f2   : > { %1987 = vmatpush1.msra.mxu0 %v3470_v26  ;;  %v2282_v26 = vrot.slane %v2273_v17, %v1285_v24  ;;  %v2376_v24 = vld [vmem:[%s5564_s10] sm:$0x1f] }
 0x2f3   : > { %3494 = vmatmul.mubr.msk.f32.vlgmr.msra.gmra.mxu0 %vm1688_vm4, %v1919_v30  ;;  %3521 = vmatmul.mubr.msk.f32.gmra.mxu1 %vm1688_vm4, %v2038_v28 }
 0x2f4   : > { %3544 = vmatprep.subr.msk.mxu0 %vm1314_vm1, %v3543_v27  ;;  %2026 = vmatprep.mubr.f32.mxu0 %v3895_v50 }
 0x2f5   : > { %3545 = vmatpush1.msk.msra.mxu0 %vm1314_vm1, %v3542_v29  ;;  %2444 = vmatprep.mubr.f32.mxu1 %v3895_v50  ;;  %v2278_v29 = vrot.slane %v2273_v17, %v4507_v18  ;;  %v2469_v17 = vld [vmem:[%s5565_s11 + $0x80] sm:$0xff] }
 0x2f6   : > { %2204 = vmatprep.subr.mxu0 %v3541_v31 }
 0x2f7   : > { %2205 = vmatpush1.msra.mxu0 %v3540_v32 }
 0x2f8   : > { %3495 = vmatmul.mubr.msk.f32.gmra.mxu0 %vm1688_vm4, %v1920_v35  ;;  %2206 = vmatprep.subr.mxu0 %v3539_v33 }
 0x2f9   : > { %2207 = vmatpush1.msra.mxu0 %v3538_v34  ;;  %2256 = vmatprep.mubr.f32.mxu0 %v3895_v50 }
 0x2fa   : > { %2208 = vmatprep.subr.mxu0 %v3537_v36 }
 0x2fb   : > { %2209 = vmatpush1.msra.mxu0 %v3536_v37 }
 0x2fc   : > { %2210 = vmatprep.subr.mxu0 %v3535_v38 }
 0x2fd   : > { %2211 = vmatpush1.msra.mxu0 %v3534_v39 }
 0x2fe   : > { %2212 = vmatprep.subr.mxu0 %v3533_v40 }
 0x2ff   : > { %2213 = vmatpush1.msra.mxu0 %v3532_v41  ;;  %v2468_v41 = vld [vmem:[%s5565_s11 + $0x78] sm:$0xff] }
 0x300   : > { %2214 = vmatprep.subr.mxu0 %v3531_v42  ;;  %v2562_v42 = vld [vmem:[%s5566_s12 + $0x78] sm:$0xff] }
 0x301   : > { %2215 = vmatpush1.msra.mxu0 %v3530_v43  ;;  %v2467_v43 = vld [vmem:[%s5565_s11 + $0x70] sm:$0xff] }
 0x302   : > { %2216 = vmatprep.subr.mxu0 %v3529_v44  ;;  %v2561_v44 = vld [vmem:[%s5566_s12 + $0x70] sm:$0xff] }
 0x303   : > { %2217 = vmatpush1.msra.mxu0 %v3528_v45  ;;  %v2466_v45 = vld [vmem:[%s5565_s11 + $0x68] sm:$0xff] }
 0x304   : > { %2218 = vmatprep.subr.mxu0 %v3527_v46  ;;  %v2560_v46 = vld [vmem:[%s5566_s12 + $0x68] sm:$0xff] }
 0x305   : > { %2219 = vmatpush1.msra.mxu0 %v3526_v48  ;;  %v2465_v48 = vld [vmem:[%s5565_s11 + $0x60] sm:$0xff] }
 0x306   : > { %2220 = vmatprep.subr.mxu0 %v3525_v51  ;;  %v2559_v51 = vld [vmem:[%s5566_s12 + $0x60] sm:$0xff] }
 0x307   : > { %2221 = vmatpush1.msra.mxu0 %v3524_v52  ;;  %v2464_v52 = vld [vmem:[%s5565_s11 + $0x58] sm:$0xff] }
 0x308   : > { %2222 = vmatprep.subr.mxu0 %v3523_v53  ;;  %v2558_v53 = vld [vmem:[%s5566_s12 + $0x58] sm:$0xff] }
 0x309   : > { %2223 = vmatpush1.msra.mxu0 %v3522_v54  ;;  %v2463_v54 = vld [vmem:[%s5565_s11 + $0x50] sm:$0xff] }
 0x30a   : > { %3546 = vmatmul.mubr.msk.f32.vlgmr.msra.gmra.mxu0 %vm1688_vm4, %v2155_v55  ;;  %v2557_v55 = vld [vmem:[%s5566_s12 + $0x50] sm:$0xff] }
 0x30b   : > { %2262 = vmatprep.mubr.f32.mxu0 %v3895_v50 }
 0x30e   : > { %3547 = vmatmul.mubr.msk.f32.gmra.mxu0 %vm1688_vm4, %v2156_v49  ;;  %v2462_v49 = vld [vmem:[%s5565_s11 + $0x48] sm:$0xff] }
 0x30f   : > { %2369 = vmatprep.mubr.f32.mxu0 %v3895_v50 }
 0x397   : > { %v1908_v47 = vpop.f32.mrf.mxu1 }
 0x399   : > { %v1910_v60 = vpop.f32.mrf.mxu1 }
 0x39b   : > { %v1819_v56 = vpop.f32.mrf.mxu0 }
 0x39c   : > { %v1914_v61 = vpop.f32.mrf.mxu1  ;;  %v1909_v7 = vadd.f32 %v1908_v47, %v1819_v56  ;;  %v2556_v56 = vld [vmem:[%s5566_s12 + $0x48] sm:$0xff]  ;;  %v2555_v47 = vld [vmem:[%s5566_s12 + $0x40] sm:$0xff] }
 0x39d   : > { %v1821_v57 = vpop.f32.mrf.mxu0 }
 0x39e   : > { %v1916_v63 = vpop.f32.mrf.mxu1  ;;  %v1911_v5 = vadd.f32 %v1910_v60, %v1821_v57  ;;  %v2461_v57 = vld [vmem:[%s5565_s11 + $0x40] sm:$0xff]  ;;  %v2554_v60 = vld [vmem:[%s5566_s12 + $0x38] sm:$0xff] }
 0x3a1   : > { %v1825_v59 = vpop.f32.mrf.mxu0 }
 0x3a2   : > { %v1915_v6 = vadd.f32 %v1914_v61, %v1825_v59  ;;  %v2460_v59 = vld [vmem:[%s5565_s11 + $0x38] sm:$0xff]  ;;  %v2553_v61 = vld [vmem:[%s5566_s12 + $0x30] sm:$0xff] }
 0x3a3   : > { %v1827_v58 = vpop.f32.mrf.mxu0 }
 0x3a4   : > { %v1917_v9 = vadd.f32 %v1916_v63, %v1827_v58  ;;  %v2459_v58 = vld [vmem:[%s5565_s11 + $0x30] sm:$0xff]  ;;  %v2552_v63 = vld [vmem:[%s5566_s12 + $0x28] sm:$0xff] }
 0x3af   : > { %v2140_v1 = vpop.f32.mrf.mxu1 }
 0x3b1   : > { %v2142_v4 = vpop.f32.mrf.mxu1 }
 0x3b3   : > { %v2022_v62 = vpop.f32.mrf.mxu0  ;;  %v2146_v13 = vpop.f32.mrf.mxu1 }
 0x3b4   : > { %v2033_v12 = vadd.f32 %v2022_v62, %v1909_v7  ;;  %v2458_v62 = vld [vmem:[%s5565_s11 + $0x28] sm:$0xff] }
 0x3b5   : > { %v2024_v0 = vpop.f32.mrf.mxu0  ;;  %v2148_v21 = vpop.f32.mrf.mxu1  ;;  %v2454_v7 = vld [vmem:[%s5565_s11 + $0x8] sm:$0xff] }
 0x3b6   : > { %v2034_v10 = vadd.f32 %v2024_v0, %v1911_v5  ;;  %v2151_v22 = vadd.f32 %v2140_v1, %v2033_v12  ;;  %v2457_v0 = vld [vmem:[%s5565_s11 + $0x20] sm:$0xff]  ;;  %v2455_v5 = vld [vmem:[%s5565_s11 + $0x10] sm:$0xff]  ;;  %v2566_v12 = vld [vmem:[%s5566_s12 + $0x98] sm:$0xff] }
 0x3b7   : > { %v2551_v1 = vld [vmem:[%s5566_s12 + $0x20] sm:$0xff] }
 0x3b8   : > { %v2028_v2 = vpop.f32.mrf.mxu0  ;;  %v2152_v19 = vadd.f32 %v2142_v4, %v2034_v10  ;;  %v2550_v4 = vld [vmem:[%s5566_s12 + $0x18] sm:$0xff]  ;;  %v2547_v10 = vld [vmem:[%s5566_s12] sm:$0xff] }
 0x3b9   : > { %v2035_v11 = vadd.f32 %v2028_v2, %v1915_v6  ;;  %v2456_v2 = vld [vmem:[%s5565_s11 + $0x18] sm:$0xff]  ;;  %v2549_v6 = vld [vmem:[%s5566_s12 + $0x10] sm:$0xff] }
 0x3ba   : > { %v2030_v8 = vpop.f32.mrf.mxu0 }
 0x3bb   : > { %v2036_v15 = vadd.f32 %v2030_v8, %v1917_v9  ;;  %v2153_v20 = vadd.f32 %v2146_v13, %v2035_v11  ;;  %v2548_v8 = vld [vmem:[%s5566_s12 + $0x8] sm:$0xff]  ;;  %v2453_v9 = vld [vmem:[%s5565_s11] sm:$0xff]  ;;  %v2472_v11 = vld [vmem:[%s5565_s11 + $0x98] sm:$0xff] }
 0x3bc   : > { %v2471_v13 = vld [vmem:[%s5565_s11 + $0x90] sm:$0xff] }
 0x3bd   : > { %v2154_v30 = vadd.f32 %v2148_v21, %v2036_v15  ;;  %v2470_v15 = vld [vmem:[%s5565_s11 + $0x88] sm:$0xff] }
 0x3ca   : > { %v2258_v14 = vpop.f32.mrf.mxu0 }
 0x3cb   : > { %v2269_v28 = vadd.f32 %v2258_v14, %v2151_v22  ;;  %v2565_v14 = vld [vmem:[%s5566_s12 + $0x90] sm:$0xff] }
 0x3cc   : > { %v2260_v16 = vpop.f32.mrf.mxu0 }
 0x3cd   : > { %v2270_v25 = vadd.f32 %v2260_v16, %v2152_v19  ;;  %v2285_v36 = vadd.f32 %v2278_v29, %v2269_v28  ;;  %v2564_v16 = vld [vmem:[%s5566_s12 + $0x88] sm:$0xff]  ;;  %v2563_v19 = vld [vmem:[%s5566_s12 + $0x80] sm:$0xff]  ;;  %v3564_v28 = vld [vmem:[%s5567_s13 + $0x90] sm:$0xff] }
 0x3ce   : > { %v2264_v23 = vpop.f32.mrf.mxu0 }
 0x3cf   : > { %v2271_v27 = vadd.f32 %v2264_v23, %v2153_v20  ;;  %v2286_v34 = vadd.f32 %v2282_v26, %v2270_v25  ;;  %v2289_v40 = vmax.f32 %v2285_v36, 0.0  ;;  %v2646_v36 = vld [vmem:[%s5567_s13 + $0x28] sm:$0xff] }
 0x3d0   : > { %v2266_v31 = vpop.f32.mrf.mxu0 }
 0x3d1   : > { %v2272_v32 = vadd.f32 %v2266_v31, %v2154_v30  ;;  %v2287_v33 = vadd.f32 %v2278_v29, %v2271_v27  ;;  %v2290_v39 = vmax.f32 %v2286_v34, 0.0  ;;  %v3565_v27 = vld [vmem:[%s5567_s13 + $0x98] sm:$0xff]  ;;  %v2650_v30 = vld [vmem:[%s5567_s13 + $0x48] sm:$0xff]  ;;  %v2649_v29 = vld [vmem:[%s5567_s13 + $0x40] sm:$0xff] }
 0x3d2   : > { %v3563_v31 = vld [vmem:[%s5567_s13 + $0x88] sm:$0xff]  ;;  %v2647_v34 = vld [vmem:[%s5567_s13 + $0x30] sm:$0xff] }
 0x3d3   : > { %v2288_v35 = vadd.f32 %v2282_v26, %v2272_v32  ;;  %v2291_v38 = vmax.f32 %v2287_v33, 0.0  ;;  %v2648_v32 = vld [vmem:[%s5567_s13 + $0x38] sm:$0xff]  ;;  %v3562_v33 = vld [vmem:[%s5567_s13 + $0x80] sm:$0xff] }
 0x3d5   : > { %v2292_v37 = vmax.f32 %v2288_v35, 0.0  ;;  %v3561_v35 = vld [vmem:[%s5567_s13 + $0x78] sm:$0xff] }
 0x3d7   : > { %3548 = vmatprep.subr.msk.mxu0 %vm2298_vm6, %v2292_v37  ;;  %3551 = vmatprep.subr.msk.mxu1 %vm2298_vm6, %v2292_v37  ;;  %v3560_v37 = vld [vmem:[%s5567_s13 + $0x70] sm:$0xff] }
 0x3d8   : > { %3549 = vmatpush1.msk.msra.mxu0 %vm2298_vm6, %v2291_v38  ;;  %3552 = vmatpush1.msk.msra.mxu1 %vm2298_vm6, %v2291_v38  ;;  %v2645_v38 = vld [vmem:[%s5567_s13 + $0x20] sm:$0xff] }
 0x3d9   : > { %2335 = vmatprep.subr.mxu0 %v2290_v39  ;;  %2410 = vmatprep.subr.mxu1 %v2290_v39  ;;  %v3559_v39 = vld [vmem:[%s5567_s13 + $0x68] sm:$0xff] }
 0x3da   : > { %2336 = vmatpush1.msra.mxu0 %v2289_v40  ;;  %2411 = vmatpush1.msra.mxu1 %v2289_v40  ;;  %v2644_v40 = vld [vmem:[%s5567_s13 + $0x18] sm:$0xff] }
 0x3db   : > { %3550 = vmatmul.mubr.msk.f32.vlgmr.msra.gmra.mxu0 %vm2294_vm7, %v2293_v3  ;;  %3553 = vmatmul.mubr.msk.f32.vlgmr.msra.gmra.mxu1 %vm2294_vm7, %v2376_v24  ;;  %v3558_v3 = vld [vmem:[%s5567_s13 + $0x60] sm:$0xff]  ;;  %v2643_v24 = vld [vmem:[%s5567_s13 + $0x10] sm:$0xff] }
 0x3dc   : > { %2477 = vmatprep.subr.mxu1 %v3895_v50  ;;  %2567 = vmatprep.subr.mxu0 %v3895_v50 }
 0x3dd   : > { %2478 = vmatpush1.msra.mxu1 %v2468_v41  ;;  %2568 = vmatpush1.msra.mxu0 %v2562_v42  ;;  %v3557_v41 = vld [vmem:[%s5567_s13 + $0x58] sm:$0xff]  ;;  %v2642_v42 = vld [vmem:[%s5567_s13 + $0x8] sm:$0xff] }
 0x3de   : > { %2479 = vmatprep.subr.mxu1 %v3895_v50  ;;  %2569 = vmatprep.subr.mxu0 %v3895_v50 }
 0x3df   : > { %2480 = vmatpush1.msra.mxu1 %v2467_v43  ;;  %2570 = vmatpush1.msra.mxu0 %v2561_v44  ;;  %v3556_v43 = vld [vmem:[%s5567_s13 + $0x50] sm:$0xff]  ;;  %v2641_v44 = vld [vmem:[%s5567_s13] sm:$0xff] }
 0x3e0   : > { %2481 = vmatprep.subr.mxu1 %v3895_v50  ;;  %2571 = vmatprep.subr.mxu0 %v3895_v50 }
 0x3e1   : > { %2482 = vmatpush1.msra.mxu1 %v2466_v45  ;;  %2572 = vmatpush1.msra.mxu0 %v2560_v46 }
 0x3e2   : > { %2483 = vmatprep.subr.mxu1 %v3895_v50  ;;  %2573 = vmatprep.subr.mxu0 %v3895_v50 }
 0x3e3   : > { %2484 = vmatpush1.msra.mxu1 %v2465_v48  ;;  %2574 = vmatpush1.msra.mxu0 %v2559_v51 }
 0x3e4   : > { %2485 = vmatprep.subr.mxu1 %v3895_v50  ;;  %2575 = vmatprep.subr.mxu0 %v3895_v50 }
 0x3e5   : > { %2486 = vmatpush1.msra.mxu1 %v2464_v52  ;;  %2576 = vmatpush1.msra.mxu0 %v2558_v53  ;;  %v3577_v53 = vld [vmem:[%s5567_s13 + $0xe8] sm:$0xff] }
 0x3e6   : > { %2487 = vmatprep.subr.mxu1 %v3895_v50  ;;  %2577 = vmatprep.subr.mxu0 %v3895_v50 }
 0x3e7   : > { %2488 = vmatpush1.msra.mxu1 %v2463_v54  ;;  %2578 = vmatpush1.msra.mxu0 %v2557_v55  ;;  %v3588_v54 = vld [vmem:[%s5567_s13 + $0x138] sm:$0xff] }
 0x3e8   : > { %2489 = vmatprep.subr.mxu1 %v3895_v50  ;;  %2579 = vmatprep.subr.mxu0 %v3895_v50 }
 0x3e9   : > { %2490 = vmatpush1.msra.mxu1 %v2462_v49  ;;  %2580 = vmatpush1.msra.mxu0 %v2556_v56  ;;  %v3576_v56 = vld [vmem:[%s5567_s13 + $0xe0] sm:$0xff] }
 0x3ea   : > { %2491 = vmatprep.subr.mxu1 %v3895_v50  ;;  %2581 = vmatprep.subr.mxu0 %v3895_v50 }
 0x3eb   : > { %2492 = vmatpush1.msra.mxu1 %v2461_v57  ;;  %2582 = vmatpush1.msra.mxu0 %v2555_v47  ;;  %v3587_v57 = vld [vmem:[%s5567_s13 + $0x130] sm:$0xff]  ;;  %v3575_v47 = vld [vmem:[%s5567_s13 + $0xd8] sm:$0xff] }
 0x3ec   : > { %2493 = vmatprep.subr.mxu1 %v3895_v50  ;;  %2583 = vmatprep.subr.mxu0 %v3895_v50 }
 0x3ed   : > { %2494 = vmatpush1.msra.mxu1 %v2460_v59  ;;  %2584 = vmatpush1.msra.mxu0 %v2554_v60  ;;  %v3586_v59 = vld [vmem:[%s5567_s13 + $0x128] sm:$0xff]  ;;  %v3574_v60 = vld [vmem:[%s5567_s13 + $0xd0] sm:$0xff] }
 0x3ee   : > { %2495 = vmatprep.subr.mxu1 %v3895_v50  ;;  %2585 = vmatprep.subr.mxu0 %v3895_v50 }
 0x3ef   : > { %2496 = vmatpush1.msra.mxu1 %v2459_v58  ;;  %2586 = vmatpush1.msra.mxu0 %v2553_v61  ;;  %v3585_v58 = vld [vmem:[%s5567_s13 + $0x120] sm:$0xff]  ;;  %v3573_v61 = vld [vmem:[%s5567_s13 + $0xc8] sm:$0xff] }
 0x3f0   : > { %2497 = vmatprep.subr.mxu1 %v3895_v50  ;;  %2587 = vmatprep.subr.mxu0 %v3895_v50 }
 0x3f1   : > { %2498 = vmatpush1.msra.mxu1 %v2458_v62  ;;  %2588 = vmatpush1.msra.mxu0 %v2552_v63  ;;  %v3584_v62 = vld [vmem:[%s5567_s13 + $0x118] sm:$0xff]  ;;  %v3572_v63 = vld [vmem:[%s5567_s13 + $0xc0] sm:$0xff] }
 0x3f2   : > { %2499 = vmatprep.subr.mxu1 %v3895_v50  ;;  %2589 = vmatprep.subr.mxu0 %v3895_v50 }
 0x3f3   : > { %2500 = vmatpush1.msra.mxu1 %v2457_v0  ;;  %2590 = vmatpush1.msra.mxu0 %v2551_v1  ;;  %v3583_v0 = vld [vmem:[%s5567_s13 + $0x110] sm:$0xff]  ;;  %v3571_v1 = vld [vmem:[%s5567_s13 + $0xb8] sm:$0xff] }
 0x3f4   : > { %2501 = vmatprep.subr.mxu1 %v3895_v50  ;;  %2591 = vmatprep.subr.mxu0 %v3895_v50 }
 0x3f5   : > { %2502 = vmatpush1.msra.mxu1 %v2456_v2  ;;  %2592 = vmatpush1.msra.mxu0 %v2550_v4  ;;  %v3582_v2 = vld [vmem:[%s5567_s13 + $0x108] sm:$0xff]  ;;  %v3570_v4 = vld [vmem:[%s5567_s13 + $0xb0] sm:$0xff] }
 0x3f6   : > { %2503 = vmatprep.subr.mxu1 %v3895_v50  ;;  %2593 = vmatprep.subr.mxu0 %v3895_v50 }
 0x3f7   : > { %2504 = vmatpush1.msra.mxu1 %v2455_v5  ;;  %2594 = vmatpush1.msra.mxu0 %v2549_v6  ;;  %v3581_v5 = vld [vmem:[%s5567_s13 + $0x100] sm:$0xff]  ;;  %v3569_v6 = vld [vmem:[%s5567_s13 + $0xa8] sm:$0xff] }
 0x3f8   : > { %2505 = vmatprep.subr.mxu1 %v3895_v50  ;;  %2595 = vmatprep.subr.mxu0 %v3895_v50 }
 0x3f9   : > { %2506 = vmatpush1.msra.mxu1 %v2454_v7  ;;  %2596 = vmatpush1.msra.mxu0 %v2548_v8  ;;  %v3580_v7 = vld [vmem:[%s5567_s13 + $0xf8] sm:$0xff]  ;;  %v3568_v8 = vld [vmem:[%s5567_s13 + $0xa0] sm:$0xff] }
 0x3fa   : > { %2507 = vmatprep.subr.mxu1 %v3895_v50  ;;  %2597 = vmatprep.subr.mxu0 %v3895_v50 }
 0x3fb   : > { %2508 = vmatpush1.msra.mxu1 %v2453_v9  ;;  %2598 = vmatpush1.msra.mxu0 %v2547_v10  ;;  %v3579_v9 = vld [vmem:[%s5567_s13 + $0xf0] sm:$0xff] }
 0x3fc   : > { %2533 = vmatprep.subr.mxu1 %v3895_v50  ;;  %2623 = vmatprep.subr.mxu0 %v3895_v50 }
 0x3fd   : > { %2534 = vmatpush2.msra.mxu1 %v2472_v11  ;;  %2624 = vmatpush2.msra.mxu0 %v2566_v12  ;;  %v3599_v12 = vld [vmem:[%s5567_s13 + $0x188] sm:$0xff] }
 0x3fe   : > { %2535 = vmatprep.subr.mxu1 %v3895_v50  ;;  %2625 = vmatprep.subr.mxu0 %v3895_v50 }
 0x3ff   : > { %2536 = vmatpush2.msra.mxu1 %v2471_v13  ;;  %2626 = vmatpush2.msra.mxu0 %v2565_v14  ;;  %v3598_v13 = vld [vmem:[%s5567_s13 + $0x180] sm:$0xff]  ;;  %v3597_v14 = vld [vmem:[%s5567_s13 + $0x178] sm:$0xff] }
 0x400   : > { %2537 = vmatprep.subr.mxu1 %v3895_v50  ;;  %2627 = vmatprep.subr.mxu0 %v3895_v50 }
 0x401   : > { %2538 = vmatpush2.msra.mxu1 %v2470_v15  ;;  %2628 = vmatpush2.msra.mxu0 %v2564_v16  ;;  %v3596_v15 = vld [vmem:[%s5567_s13 + $0x170] sm:$0xff]  ;;  %v3595_v16 = vld [vmem:[%s5567_s13 + $0x168] sm:$0xff] }
 0x402   : > { %2539 = vmatprep.subr.mxu1 %v3895_v50  ;;  %2629 = vmatprep.subr.mxu0 %v3895_v50 }
 0x403   : > { %2540 = vmatpush2.msra.mxu1 %v2469_v17  ;;  %2630 = vmatpush2.msra.mxu0 %v2563_v19  ;;  %v3594_v17 = vld [vmem:[%s5567_s13 + $0x160] sm:$0xff]  ;;  %v3593_v19 = vld [vmem:[%s5567_s13 + $0x158] sm:$0xff] }
 0x404   : > { %3692 = vmatprep.subr.mxu1 %v3895_v50  ;;  %3715 = vmatprep.subr.mxu0 %v3895_v50 }
 0x49b   : > { %v2371_v20 = vpop.f32.mrf.mxu0  ;;  %v2446_v21 = vpop.f32.mrf.mxu1 }
 0x49c   : > { %v2451_v26 = vmax.f32 %v2371_v20, %v2446_v21  ;;  %v3592_v20 = vld [vmem:[%s5567_s13 + $0x150] sm:$0xff]  ;;  %v3591_v21 = vld [vmem:[%s5567_s13 + $0x148] sm:$0xff] }
 0x49d   : > { %v2373_v22 = vpop.f32.mrf.mxu0  ;;  %v2448_v23 = vpop.f32.mrf.mxu1 }
 0x49e   : > { %v2452_v25 = vmax.f32 %v2373_v22, %v2448_v23  ;;  %v3590_v22 = vld [vmem:[%s5567_s13 + $0x140] sm:$0xff] }
 0x4a0   : > { %3554 = vmatprep.mubr.msk.f32.mxu1 %vm2473_vm8, %v2452_v25  ;;  %3555 = vmatprep.mubr.msk.f32.mxu0 %vm2473_vm8, %v2452_v25  ;;  %v3086_v25 = vld [vmem:[%s5569_s15 + $0x78] sm:$0xff] }
 0x4a1   : > { %2542 = vmatmul.mubr.f32.vlgmr.msra.gmra.mxu1 %v2451_v26  ;;  %2632 = vmatmul.mubr.f32.vlgmr.msra.gmra.mxu0 %v2451_v26  ;;  %v3085_v26 = vld [vmem:[%s5569_s15 + $0x70] sm:$0xff] }
 0x4a2   : > { %3693 = vmatpush3.msra.mxu1 %v3565_v27  ;;  %3716 = vmatpush3.msra.mxu0 %v2650_v30  ;;  %v3084_v27 = vld [vmem:[%s5569_s15 + $0x68] sm:$0xff]  ;;  %v3083_v30 = vld [vmem:[%s5569_s15 + $0x60] sm:$0xff] }
 0x4a3   : > { %3694 = vmatprep.subr.mxu1 %v3895_v50  ;;  %3717 = vmatprep.subr.mxu0 %v3895_v50 }
 0x4a4   : > { %3695 = vmatpush3.msra.mxu1 %v3564_v28  ;;  %3718 = vmatpush3.msra.mxu0 %v2649_v29  ;;  %v3082_v28 = vld [vmem:[%s5569_s15 + $0x58] sm:$0xff]  ;;  %v3081_v29 = vld [vmem:[%s5569_s15 + $0x50] sm:$0xff] }
 0x4a5   : > { %3696 = vmatprep.subr.mxu1 %v3895_v50  ;;  %3719 = vmatprep.subr.mxu0 %v3895_v50 }
 0x4a6   : > { %3697 = vmatpush3.msra.mxu1 %v3563_v31  ;;  %3720 = vmatpush3.msra.mxu0 %v2648_v32  ;;  %v3080_v31 = vld [vmem:[%s5569_s15 + $0x48] sm:$0xff]  ;;  %v3079_v32 = vld [vmem:[%s5569_s15 + $0x40] sm:$0xff] }
 0x4a7   : > { %3698 = vmatprep.subr.mxu1 %v3895_v50  ;;  %3721 = vmatprep.subr.mxu0 %v3895_v50 }
 0x4a8   : > { %3699 = vmatpush3.msra.mxu1 %v3562_v33  ;;  %3722 = vmatpush3.msra.mxu0 %v2647_v34  ;;  %v3078_v33 = vld [vmem:[%s5569_s15 + $0x38] sm:$0xff]  ;;  %v3077_v34 = vld [vmem:[%s5569_s15 + $0x30] sm:$0xff] }
 0x4a9   : > { %3700 = vmatprep.subr.mxu1 %v3895_v50  ;;  %3723 = vmatprep.subr.mxu0 %v3895_v50 }
 0x4aa   : > { %3701 = vmatpush3.msra.mxu1 %v3561_v35  ;;  %3724 = vmatpush3.msra.mxu0 %v2646_v36  ;;  %v3076_v35 = vld [vmem:[%s5569_s15 + $0x28] sm:$0xff]  ;;  %v3075_v36 = vld [vmem:[%s5569_s15 + $0x20] sm:$0xff] }
 0x4ab   : > { %3702 = vmatprep.subr.mxu1 %v3895_v50  ;;  %3725 = vmatprep.subr.mxu0 %v3895_v50 }
 0x4ac   : > { %3703 = vmatpush3.msra.mxu1 %v3560_v37  ;;  %3726 = vmatpush3.msra.mxu0 %v2645_v38  ;;  %v3074_v37 = vld [vmem:[%s5569_s15 + $0x18] sm:$0xff]  ;;  %v3073_v38 = vld [vmem:[%s5569_s15 + $0x10] sm:$0xff] }
 0x4ad   : > { %3704 = vmatprep.subr.mxu1 %v3895_v50  ;;  %3727 = vmatprep.subr.mxu0 %v3895_v50 }
 0x4ae   : > { %3705 = vmatpush3.msra.mxu1 %v3559_v39  ;;  %3728 = vmatpush3.msra.mxu0 %v2644_v40  ;;  %v3072_v39 = vld [vmem:[%s5569_s15 + $0x8] sm:$0xff]  ;;  %v3071_v40 = vld [vmem:[%s5569_s15] sm:$0xff] }
 0x4af   : > { %3706 = vmatprep.subr.mxu1 %v3895_v50  ;;  %3729 = vmatprep.subr.mxu0 %v3895_v50 }
 0x4b0   : > { %3707 = vmatpush3.msra.mxu1 %v3558_v3  ;;  %3730 = vmatpush3.msra.mxu0 %v2643_v24  ;;  %v3174_v3 = vld [vmem:[%s5571_s17 + $0x78] sm:$0xff]  ;;  %v3173_v24 = vld [vmem:[%s5571_s17 + $0x70] sm:$0xff] }
 0x4b1   : > { %3708 = vmatprep.subr.mxu1 %v3895_v50  ;;  %3731 = vmatprep.subr.mxu0 %v3895_v50 }
 0x4b2   : > { %3709 = vmatpush3.msra.mxu1 %v3557_v41  ;;  %3732 = vmatpush3.msra.mxu0 %v2642_v42  ;;  %v3172_v41 = vld [vmem:[%s5571_s17 + $0x68] sm:$0xff]  ;;  %v3171_v42 = vld [vmem:[%s5571_s17 + $0x60] sm:$0xff] }
 0x4b3   : > { %3710 = vmatprep.subr.mxu1 %v3895_v50  ;;  %3733 = vmatprep.subr.mxu0 %v3895_v50 }
 0x4b4   : > { %3711 = vmatpush3.msra.mxu1 %v3556_v43  ;;  %3734 = vmatpush3.msra.mxu0 %v2641_v44  ;;  %v3170_v43 = vld [vmem:[%s5571_s17 + $0x58] sm:$0xff]  ;;  %v3169_v44 = vld [vmem:[%s5571_s17 + $0x50] sm:$0xff] }
 0x4b5   : > { %3712 = vmatprep.mubr.msk.f32.mxu1 %vm3896_vm9, %v3895_v50  ;;  %3735 = vmatprep.mubr.msk.f32.mxu0 %vm3896_vm9, %v3895_v50 }
 0x4b6   : > { %3738 = vmatprep.subr.mxu1 %v3895_v50  ;;  %3761 = vmatprep.subr.mxu0 %v3895_v50 }
 0x561   : > { %v2543_v45 = vpop.f32.mrf.mxu1  ;;  %v2633_v46 = vpop.f32.mrf.mxu0 }
 0x562   : > { %v2637_v48 = vmax.f32 %v2543_v45, %v2633_v46  ;;  %v3168_v45 = vld [vmem:[%s5571_s17 + $0x48] sm:$0xff]  ;;  %v3167_v46 = vld [vmem:[%s5571_s17 + $0x40] sm:$0xff] }
 0x563   : > { %v2545_v51 = vpop.f32.mrf.mxu1  ;;  %v2635_v52 = vpop.f32.mrf.mxu0 }
 0x564   : > { %2639 = vst.msk [vmem:[#allocation3] sm:$0x1f] %vm2638_vm10, %v2637_v48  ;;  %v3166_v48 = vld [vmem:[%s5571_s17 + $0x38] sm:$0xff]  ;;  %v3165_v51 = vld [vmem:[%s5571_s17 + $0x30] sm:$0xff]  ;;  %v3164_v52 = vld [vmem:[%s5571_s17 + $0x28] sm:$0xff] }
 0x56b   : > { %v2651_v55 = vld [vmem:[#allocation3 + $0x1] sm:$0x1]  ;;  %v2640_v49 = vld [vmem:[#allocation3] sm:$0x1]  ;;  %v2810_v10 = vld [vmem:[#allocation3 + $0x2] sm:$0x1] }
 0x56c   : > { %3713 = vmatmul.mubr.msk.f32.vlgmr.msra.gmra.mxu1 %vm2663_vm11, %v2651_v55  ;;  %3736 = vmatmul.mubr.msk.f32.vlgmr.msra.gmra.mxu0 %vm2663_vm11, %v2640_v49  ;;  %v2896_v11 = vld [vmem:[#allocation3 + $0x3] sm:$0x1]  ;;  %v2982_v23 = vld [vmem:[#allocation3 + $0x4] sm:$0x1] }
 0x56d   : > { %3739 = vmatpush3.msra.mxu1 %v3577_v53  ;;  %3762 = vmatpush3.msra.mxu0 %v3588_v54  ;;  %v3163_v53 = vld [vmem:[%s5571_s17 + $0x20] sm:$0xff]  ;;  %v3162_v54 = vld [vmem:[%s5571_s17 + $0x18] sm:$0xff] }
 0x56e   : > { %3740 = vmatprep.subr.mxu1 %v3895_v50  ;;  %3763 = vmatprep.subr.mxu0 %v3895_v50 }
 0x56f   : > { %3741 = vmatpush3.msra.mxu1 %v3576_v56  ;;  %3764 = vmatpush3.msra.mxu0 %v3587_v57 }
 0x570   : > { %3742 = vmatprep.subr.mxu1 %v3895_v50  ;;  %3765 = vmatprep.subr.mxu0 %v3895_v50 }
 0x571   : > { %3743 = vmatpush3.msra.mxu1 %v3575_v47  ;;  %3766 = vmatpush3.msra.mxu0 %v3586_v59 }
 0x572   : > { %3744 = vmatprep.subr.mxu1 %v3895_v50  ;;  %3767 = vmatprep.subr.mxu0 %v3895_v50 }
 0x573   : > { %3745 = vmatpush3.msra.mxu1 %v3574_v60  ;;  %3768 = vmatpush3.msra.mxu0 %v3585_v58 }
 0x574   : > { %3746 = vmatprep.subr.mxu1 %v3895_v50  ;;  %3769 = vmatprep.subr.mxu0 %v3895_v50 }
 0x575   : > { %3747 = vmatpush3.msra.mxu1 %v3573_v61  ;;  %3770 = vmatpush3.msra.mxu0 %v3584_v62 }
 0x576   : > { %3748 = vmatprep.subr.mxu1 %v3895_v50  ;;  %3771 = vmatprep.subr.mxu0 %v3895_v50 }
 0x577   : > { %3749 = vmatpush3.msra.mxu1 %v3572_v63  ;;  %3772 = vmatpush3.msra.mxu0 %v3583_v0 }
 0x578   : > { %3750 = vmatprep.subr.mxu1 %v3895_v50  ;;  %3773 = vmatprep.subr.mxu0 %v3895_v50 }
 0x579   : > { %3751 = vmatpush3.msra.mxu1 %v3571_v1  ;;  %3774 = vmatpush3.msra.mxu0 %v3582_v2  ;;  %v3068_v1 = vld [vmem:[%s5568_s14] sm:$0x1] }
 0x57a   : > { %3752 = vmatprep.subr.mxu1 %v3895_v50  ;;  %3775 = vmatprep.subr.mxu0 %v3895_v50 }
 0x57b   : > { %3753 = vmatpush3.msra.mxu1 %v3570_v4  ;;  %3776 = vmatpush3.msra.mxu0 %v3581_v5 }
 0x57c   : > { %3754 = vmatprep.subr.mxu1 %v3895_v50  ;;  %3777 = vmatprep.subr.mxu0 %v3895_v50 }
 0x57d   : > { %3755 = vmatpush3.msra.mxu1 %v3569_v6  ;;  %3778 = vmatpush3.msra.mxu0 %v3580_v7  ;;  %v3161_v7 = vld [vmem:[%s5571_s17 + $0x10] sm:$0xff] }
 0x57e   : > { %3756 = vmatprep.subr.mxu1 %v3895_v50  ;;  %3779 = vmatprep.subr.mxu0 %v3895_v50 }
 0x57f   : > { %3757 = vmatpush3.msra.mxu1 %v3568_v8  ;;  %3758 = vmatprep.mubr.msk.f32.mxu1 %vm3896_vm9, %v3895_v50  ;;  %v3160_v8 = vld [vmem:[%s5571_s17 + $0x8] sm:$0xff] }
 0x580   : > { %3780 = vmatpush3.msra.mxu0 %v3579_v9  ;;  %3781 = vmatprep.mubr.msk.f32.mxu0 %vm3896_vm9, %v3895_v50  ;;  %v3159_v9 = vld [vmem:[%s5571_s17] sm:$0xff] }
 0x581   : > { %3759 = vmatmul.mubr.msk.f32.vlgmr.msra.gmra.mxu1 %vm2663_vm11, %v2810_v10  ;;  %3782 = vmatmul.mubr.msk.f32.vlgmr.msra.gmra.mxu0 %vm2663_vm11, %v2896_v11  ;;  %v3087_v10 = vld [vmem:[%s5570_s16] sm:$0x1] }
 0x582   : > { %3784 = vmatprep.subr.mxu1 %v3895_v50  ;;  %3804 = vmatprep.mubr.msk.f32.mxu1 %vm3896_vm9, %v3895_v50 }
 0x583   : > { %3785 = vmatpush3.msra.mxu1 %v3599_v12  ;;  %3807 = vmatprep.subr.mxu0 %v3895_v50 }
 0x584   : > { %3786 = vmatprep.subr.mxu1 %v3895_v50  ;;  %3839 = vmatprep.mubr.msk.f32.mxu0 %vm3896_vm9, %v3895_v50 }
 0x585   : > { %3787 = vmatpush3.msra.mxu1 %v3598_v13  ;;  %3808 = vmatpush3.msra.mxu0 %v3086_v25 }
 0x586   : > { %3788 = vmatprep.subr.mxu1 %v3895_v50  ;;  %3809 = vmatprep.subr.mxu0 %v3895_v50 }
 0x587   : > { %3789 = vmatpush3.msra.mxu1 %v3597_v14  ;;  %3810 = vmatpush3.msra.mxu0 %v3085_v26 }
 0x588   : > { %3790 = vmatprep.subr.mxu1 %v3895_v50  ;;  %3811 = vmatprep.subr.mxu0 %v3895_v50 }
 0x589   : > { %3791 = vmatpush3.msra.mxu1 %v3596_v15  ;;  %3812 = vmatpush3.msra.mxu0 %v3084_v27 }
 0x58a   : > { %3792 = vmatprep.subr.mxu1 %v3895_v50  ;;  %3813 = vmatprep.subr.mxu0 %v3895_v50 }
 0x58b   : > { %3793 = vmatpush3.msra.mxu1 %v3595_v16  ;;  %3814 = vmatpush3.msra.mxu0 %v3083_v30 }
 0x58c   : > { %3794 = vmatprep.subr.mxu1 %v3895_v50  ;;  %3815 = vmatprep.subr.mxu0 %v3895_v50 }
 0x58d   : > { %3795 = vmatpush3.msra.mxu1 %v3594_v17  ;;  %3816 = vmatpush3.msra.mxu0 %v3082_v28 }
 0x58e   : > { %3796 = vmatprep.subr.mxu1 %v3895_v50  ;;  %3817 = vmatprep.subr.mxu0 %v3895_v50 }
 0x58f   : > { %3797 = vmatpush3.msra.mxu1 %v3593_v19  ;;  %3818 = vmatpush3.msra.mxu0 %v3081_v29 }
 0x590   : > { %3798 = vmatprep.subr.mxu1 %v3895_v50  ;;  %3819 = vmatprep.subr.mxu0 %v3895_v50 }
 0x591   : > { %3799 = vmatpush3.msra.mxu1 %v3592_v20  ;;  %3820 = vmatpush3.msra.mxu0 %v3080_v31 }
 0x592   : > { %3800 = vmatprep.subr.mxu1 %v3895_v50  ;;  %3821 = vmatprep.subr.mxu0 %v3895_v50 }
 0x593   : > { %3801 = vmatpush3.msra.mxu1 %v3591_v21  ;;  %3822 = vmatpush3.msra.mxu0 %v3079_v32 }
 0x594   : > { %3802 = vmatprep.subr.mxu1 %v3895_v50  ;;  %3823 = vmatprep.subr.mxu0 %v3895_v50 }
 0x595   : > { %3803 = vmatpush3.msra.mxu1 %v3590_v22  ;;  %3824 = vmatpush3.msra.mxu0 %v3078_v33 }
 0x596   : > { %3805 = vmatmul.mubr.msk.f32.vlgmr.msra.gmra.mxu1 %vm2663_vm11, %v2982_v23  ;;  %3842 = vmatprep.subr.mxu1 %v3895_v50 }
 0x597   : > { %3874 = vmatprep.mubr.msk.f32.mxu1 %vm3896_vm9, %v3895_v50  ;;  %3825 = vmatprep.subr.mxu0 %v3895_v50 }
 0x598   : > { %3826 = vmatpush3.msra.mxu0 %v3077_v34  ;;  %3843 = vmatpush3.msra.mxu1 %v3174_v3 }
 0x599   : > { %3827 = vmatprep.subr.mxu0 %v3895_v50  ;;  %3844 = vmatprep.subr.mxu1 %v3895_v50 }
 0x59a   : > { %3828 = vmatpush3.msra.mxu0 %v3076_v35  ;;  %3845 = vmatpush3.msra.mxu1 %v3173_v24 }
 0x59b   : > { %3829 = vmatprep.subr.mxu0 %v3895_v50  ;;  %3846 = vmatprep.subr.mxu1 %v3895_v50 }
 0x59c   : > { %3830 = vmatpush3.msra.mxu0 %v3075_v36  ;;  %3847 = vmatpush3.msra.mxu1 %v3172_v41 }
 0x59d   : > { %3831 = vmatprep.subr.mxu0 %v3895_v50  ;;  %3848 = vmatprep.subr.mxu1 %v3895_v50 }
 0x59e   : > { %3832 = vmatpush3.msra.mxu0 %v3074_v37  ;;  %3849 = vmatpush3.msra.mxu1 %v3171_v42 }
 0x59f   : > { %3833 = vmatprep.subr.mxu0 %v3895_v50  ;;  %3850 = vmatprep.subr.mxu1 %v3895_v50 }
 0x5a0   : > { %3834 = vmatpush3.msra.mxu0 %v3073_v38  ;;  %3851 = vmatpush3.msra.mxu1 %v3170_v43 }
 0x5a1   : > { %3835 = vmatprep.subr.mxu0 %v3895_v50  ;;  %3852 = vmatprep.subr.mxu1 %v3895_v50 }
 0x5a2   : > { %3836 = vmatpush3.msra.mxu0 %v3072_v39  ;;  %3853 = vmatpush3.msra.mxu1 %v3169_v44 }
 0x5a3   : > { %3837 = vmatprep.subr.mxu0 %v3895_v50  ;;  %3854 = vmatprep.subr.mxu1 %v3895_v50 }
 0x5a4   : > { %3838 = vmatpush3.msra.mxu0 %v3071_v40  ;;  %3855 = vmatpush3.msra.mxu1 %v3168_v45 }
 0x5a5   : > { %3856 = vmatprep.subr.mxu1 %v3895_v50 }
 0x5a6   : > { %3857 = vmatpush3.msra.mxu1 %v3167_v46 }
 0x5a7   : > { %3858 = vmatprep.subr.mxu1 %v3895_v50 }
 0x5a8   : > { %3859 = vmatpush3.msra.mxu1 %v3166_v48 }
 0x5a9   : > { %3860 = vmatprep.subr.mxu1 %v3895_v50 }
 0x5aa   : > { %3861 = vmatpush3.msra.mxu1 %v3165_v51 }
 0x5ab   : > { %3862 = vmatprep.subr.mxu1 %v3895_v50 }
 0x5ac   : > { %3863 = vmatpush3.msra.mxu1 %v3164_v52 }
 0x5ad   : > { %3864 = vmatprep.subr.mxu1 %v3895_v50 }
 0x5ae   : > { %3865 = vmatpush3.msra.mxu1 %v3163_v53 }
 0x5af   : > { %3866 = vmatprep.subr.mxu1 %v3895_v50 }
 0x5b0   : > { %3867 = vmatpush3.msra.mxu1 %v3162_v54 }
 0x5b1   : > { %3868 = vmatprep.subr.mxu1 %v3895_v50 }
 0x5b2   : > { %3869 = vmatpush3.msra.mxu1 %v3161_v7 }
 0x5b3   : > { %3870 = vmatprep.subr.mxu1 %v3895_v50 }
 0x5b4   : > { %3871 = vmatpush3.msra.mxu1 %v3160_v8 }
 0x5b5   : > { %3872 = vmatprep.subr.mxu1 %v3895_v50  ;;  %v3175_v50 = vld [vmem:[%s5572_s18] sm:$0x1] }
 0x5b6   : > { %3873 = vmatpush3.msra.mxu1 %v3159_v9 }
 0x62c   : > { %v2733_v55 = vpop.f32.mrf.mxu1  ;;  %v2806_v49 = vpop.f32.mrf.mxu0 }
 0x62d   : > { %v2807_v61 = vadd.f32 %v2806_v49, %v2733_v55 }
 0x62e   : > { %v3714_v56 = vpop.f32.mrf.mxu1  ;;  %v3737_v57 = vpop.f32.mrf.mxu0 }
 0x641   : > { %v2891_v47 = vpop.f32.mrf.mxu1  ;;  %v2977_v59 = vpop.f32.mrf.mxu0 }
 0x642   : > { %v2895_v62 = vadd.f32 %v2891_v47, %v2807_v61 }
 0x643   : > { %v3760_v60 = vpop.f32.mrf.mxu1  ;;  %v3783_v58 = vpop.f32.mrf.mxu0 }
 0x644   : > { %v2981_v63 = vadd.f32 %v2977_v59, %v2895_v62 }
 0x656   : > { %v3063_v0 = vpop.f32.mrf.mxu1 }
 0x657   : > { %v3067_v2 = vadd.f32 %v3063_v0, %v2981_v63 }
 0x658   : > { %v3806_v4 = vpop.f32.mrf.mxu1 }
 0x659   : > { %v3069_v5 = vadd.f32 %v3068_v1, %v3067_v2 }
 0x65b   : > { %v3070_v6 = vmax.f32 %v3069_v5, 0.0 }
 0x65d   : > { %3840 = vmatmul.mubr.f32.vlgmr.msra.gmra.mxu0 %v3070_v6 }
 0x71d   : > { %v3154_v11 = vpop.f32.mrf.mxu0 }
 0x71e   : > { %v3155_v12 = vadd.f32 %v3154_v11, %v3087_v10 }
 0x71f   : > { %v3841_v13 = vpop.f32.mrf.mxu0 }
 0x720   : > { %v3158_v14 = vmax.f32 %v3155_v12, 0.0 }
 0x722   : > { %3875 = vmatmul.mubr.f32.vlgmr.msra.gmra.mxu1 %v3158_v14 }
 0x7e2   : > { %v3242_v15 = vpop.f32.mrf.mxu1 }
 0x7e3   : > { %v3243_v16 = vadd.f32 %v3242_v15, %v3175_v50 }
 0x7e4   : > { %v3876_v17 = vpop.f32.mrf.mxu1 }
 0x7e5   : > { %v3249_v19 = vrot.slane %v3243_v16, %v4507_v18 }
 0x7e7   : > { %3250 = vst [vmem:[%s602_s26] sm:$0xff] %v3249_v19 }
 0x7e8 PF: > { %s5587_s27 = sld [smem:[#allocation4_spill]] }
 0x7ee   : > { %s29_s0 = sadd.s32 1, %s5587_s27  }
 0x7ef   : > { %p26_p5 = scmp.ge.s32.totalorder %s29_s0, 4  }
 0x7f1   :  { %28 = sbr.rel (!%p26_p5) target bundleno = 5 (0x5), region = 138 }

</bundles_post_ra>
